<compile_context>
chip_gen: v7x
topology: tpu7x:2x2x1
jax: 0.10.0
libtpu: 0.0.40
codegen_flags: <defaults>
</compile_context>

<pallas_src>
import functools
import math

import jax
import jax.numpy as jnp
from jax.experimental import pallas as pl

# ----------------------------- config (small) -----------------------------
VOCAB = 100
MAX_POS = 32
HIDDEN = 64
N_HEADS = 2
HEAD_DIM = HIDDEN // N_HEADS
FFN_DIM = 128
N_LAYERS = 2
N_CLASSES = 3
CLS_PAD = 128          # lane-dense padded width of the classifier output
LN_EPS = 1e-12
MASK_NEG = 1e30        # f32-safe large-negative magnitude for masked keys


def _full_spec(shape):
    # whole-array block (no grid) -> single kernel invocation, block == array
    return pl.BlockSpec(shape, lambda: (0,) * len(shape))


def _ln(x, g, b):
    mu = jnp.mean(x, axis=-1, keepdims=True)
    xc = x - mu
    var = jnp.mean(xc * xc, axis=-1, keepdims=True)
    return xc * jax.lax.rsqrt(var + LN_EPS) * g + b


# --------------------------- fused forward kernel ---------------------------
def _fused_forward_kernel(
    x_ref, bias_ref, sel_ref,
    emb_g_ref, emb_b_ref,
    wqkv_ref, bqkv_ref, wo_ref, bo_ref, saln_g_ref, saln_b_ref,
    w1_ref, b1_ref, w2_ref, b2_ref, oln_g_ref, oln_b_ref,
    wcls_ref, bcls_ref,
    out_ref, *, batch, seq,
):
    # embeddings were gathered in the wrapper; embedding LayerNorm runs here
    h = _ln(x_ref[...], emb_g_ref[...], emb_b_ref[...])            # (B*S, H)
    bias = bias_ref[...]                                            # (B, S) additive
    scale = 1.0 / math.sqrt(HEAD_DIM)

    for li in range(N_LAYERS):                                      # static unroll
        # ---- fused QKV projection: one (B*S, H) @ (H, 3H) matmul ----
        qkv = (jnp.dot(h, wqkv_ref[li], preferred_element_type=jnp.float32)
               + bqkv_ref[li])                                       # (B*S, 3H)
        wo = wo_ref[li]                                              # (H, H)

        # ---- per-head attention, O-projection accumulated in place ----
        sa = jnp.zeros((batch * seq, HIDDEN), jnp.float32)
        for hd in range(N_HEADS):
            q0 = hd * HEAD_DIM
            k0 = HIDDEN + hd * HEAD_DIM
            v0 = 2 * HIDDEN + hd * HEAD_DIM
            q = (qkv[:, q0:q0 + HEAD_DIM] * scale).reshape(batch, seq, HEAD_DIM)
            k = qkv[:, k0:k0 + HEAD_DIM].reshape(batch, seq, HEAD_DIM)
            v = qkv[:, v0:v0 + HEAD_DIM].reshape(batch, seq, HEAD_DIM)

            s = jnp.einsum("bqd,bkd->bqk", q, k,
                           preferred_element_type=jnp.float32)       # (B, S, S)
            s = s + bias[:, None, :]                                  # additive mask
            m = jnp.max(s, axis=-1, keepdims=True)
            p = jnp.exp(s - m)
            l = jnp.sum(p, axis=-1, keepdims=True)
            p = p * pl.reciprocal(l, approx=True)                     # EUP divide
            ctx = jnp.einsum("bqk,bkd->bqd", p, v,
                             preferred_element_type=jnp.float32)      # (B, S, Dh)
            ctx = ctx.reshape(batch * seq, HEAD_DIM)
            sa = sa + jnp.dot(ctx, wo[hd * HEAD_DIM:(hd + 1) * HEAD_DIM, :],
                              preferred_element_type=jnp.float32)
        sa = sa + bo_ref[li]

        # ---- residual add fused into LayerNorm ----
        h = _ln(sa + h, saln_g_ref[li], saln_b_ref[li])

        # ---- feed-forward ----
        f = (jnp.dot(h, w1_ref[li], preferred_element_type=jnp.float32)
             + b1_ref[li])
        # TODO(synk): DistilBERT uses erf-GELU; tanh approximation used here.
        f = jax.nn.gelu(f, approximate=True)
        f = (jnp.dot(f, w2_ref[li], preferred_element_type=jnp.float32)
             + b2_ref[li])
        h = _ln(f + h, oln_g_ref[li], oln_b_ref[li])

    # ---- [CLS] pooling via row-selection matmul + classifier head ----
    # dropout(p=0.3) is identity at inference.
    pooled = jnp.dot(sel_ref[...], h, preferred_element_type=jnp.float32)   # (B, H)
    out_ref[...] = (jnp.dot(pooled, wcls_ref[...],
                            preferred_element_type=jnp.float32)
                    + bcls_ref[...])                                         # (B, 128)


# ------------------------------ parameters ---------------------------------
def init_params(key):
    def dense(k, fan_in, fan_out):
        w = jax.random.normal(k, (fan_in, fan_out), jnp.float32) * 0.02
        b = jnp.zeros((fan_out,), jnp.float32)
        return w, b

    keys = jax.random.split(key, 3 + N_LAYERS)
    params = {
        "word_emb": jax.random.normal(keys[0], (VOCAB, HIDDEN), jnp.float32) * 0.02,
        "pos_emb": jax.random.normal(keys[1], (MAX_POS, HIDDEN), jnp.float32) * 0.02,
        "emb_ln_g": jnp.ones((1, HIDDEN), jnp.float32),
        "emb_ln_b": jnp.zeros((1, HIDDEN), jnp.float32),
    }

    wqkv, bqkv, wo, bo = [], [], [], []
    sg, sb, w1, b1, w2, b2, og, ob = [], [], [], [], [], [], [], []
    for li in range(N_LAYERS):
        lk = jax.random.split(keys[2 + li], 6)
        wq, bq = dense(lk[0], HIDDEN, HIDDEN)
        wk, bk = dense(lk[1], HIDDEN, HIDDEN)
        wv, bv = dense(lk[2], HIDDEN, HIDDEN)
        wqkv.append(jnp.concatenate([wq, wk, wv], axis=1))        # (H, 3H)
        bqkv.append(jnp.concatenate([bq, bk, bv])[None, :])       # (1, 3H)
        w, b = dense(lk[3], HIDDEN, HIDDEN)
        wo.append(w)
        bo.append(b[None, :])
        sg.append(jnp.ones((1, HIDDEN), jnp.float32))
        sb.append(jnp.zeros((1, HIDDEN), jnp.float32))
        w, b = dense(lk[4], HIDDEN, FFN_DIM)
        w1.append(w)
        b1.append(b[None, :])
        w, b = dense(lk[5], FFN_DIM, HIDDEN)
        w2.append(w)
        b2.append(b[None, :])
        og.append(jnp.ones((1, HIDDEN), jnp.float32))
        ob.append(jnp.zeros((1, HIDDEN), jnp.float32))

    params.update(
        wqkv=jnp.stack(wqkv), bqkv=jnp.stack(bqkv),
        wo=jnp.stack(wo), bo=jnp.stack(bo),
        sa_ln_g=jnp.stack(sg), sa_ln_b=jnp.stack(sb),
        w1=jnp.stack(w1), b1=jnp.stack(b1),
        w2=jnp.stack(w2), b2=jnp.stack(b2),
        out_ln_g=jnp.stack(og), out_ln_b=jnp.stack(ob),
    )

    wc, bc = dense(keys[-1], HIDDEN, N_CLASSES)
    params["wcls"] = (
        jnp.zeros((HIDDEN, CLS_PAD), jnp.float32).at[:, :N_CLASSES].set(wc)
    )
    params["bcls"] = (
        jnp.zeros((1, CLS_PAD), jnp.float32).at[:, :N_CLASSES].set(bc)
    )
    return params


# ------------------------------ forward pass --------------------------------
def domain_classifier_forward(params, input_ids, attention_mask):
    B, S = input_ids.shape

    # embedding gather + positional add stay as XLA glue (data-dependent gather)
    x = jnp.take(params["word_emb"], input_ids, axis=0)           # (B, S, H)
    x = x + params["pos_emb"][:S][None, :, :]
    x = x.reshape(B * S, HIDDEN).astype(jnp.float32)

    # additive attention bias: 0 where attended, -1e30 (f32-safe) where masked
    attn_bias = (attention_mask.astype(jnp.float32) - 1.0) * MASK_NEG   # (B, S)

    # [CLS]-row selector so pooling is an MXU matmul inside the kernel
    cls_sel = jax.nn.one_hot(jnp.arange(B) * S, B * S, dtype=jnp.float32)  # (B, B*S)

    kern = functools.partial(_fused_forward_kernel, batch=B, seq=S)
    logits_pad = pl.pallas_call(
        kern,
        out_shape=jax.ShapeDtypeStruct((B, CLS_PAD), jnp.float32),
        in_specs=[
            _full_spec((B * S, HIDDEN)),                 # x
            _full_spec((B, S)),                          # attn_bias
            _full_spec((B, B * S)),                      # cls_sel
            _full_spec((1, HIDDEN)),                     # emb_ln_g
            _full_spec((1, HIDDEN)),                     # emb_ln_b
            _full_spec((N_LAYERS, HIDDEN, 3 * HIDDEN)),  # wqkv
            _full_spec((N_LAYERS, 1, 3 * HIDDEN)),       # bqkv
            _full_spec((N_LAYERS, HIDDEN, HIDDEN)),      # wo
            _full_spec((N_LAYERS, 1, HIDDEN)),           # bo
            _full_spec((N_LAYERS, 1, HIDDEN)),           # sa_ln_g
            _full_spec((N_LAYERS, 1, HIDDEN)),           # sa_ln_b
            _full_spec((N_LAYERS, HIDDEN, FFN_DIM)),     # w1
            _full_spec((N_LAYERS, 1, FFN_DIM)),          # b1
            _full_spec((N_LAYERS, FFN_DIM, HIDDEN)),     # w2
            _full_spec((N_LAYERS, 1, HIDDEN)),           # b2
            _full_spec((N_LAYERS, 1, HIDDEN)),           # out_ln_g
            _full_spec((N_LAYERS, 1, HIDDEN)),           # out_ln_b
            _full_spec((HIDDEN, CLS_PAD)),               # wcls (zero-padded)
            _full_spec((1, CLS_PAD)),                    # bcls (zero-padded)
        ],
        out_specs=_full_spec((B, CLS_PAD)),
    )(
        x, attn_bias, cls_sel,
        params["emb_ln_g"], params["emb_ln_b"],
        params["wqkv"], params["bqkv"], params["wo"], params["bo"],
        params["sa_ln_g"], params["sa_ln_b"],
        params["w1"], params["b1"], params["w2"], params["b2"],
        params["out_ln_g"], params["out_ln_b"],
        params["wcls"], params["bcls"],
    )
    return logits_pad[:, :N_CLASSES]


# ---------------------------------- main -------------------------------------
if __name__ == "__main__":
    key = jax.random.PRNGKey(0)
    pkey, ikey = jax.random.split(key)

    params = init_params(pkey)

    B, S = 2, 8
    input_ids = jax.random.randint(ikey, (B, S), 0, VOCAB, dtype=jnp.int32)
    attention_mask = jnp.ones((B, S), dtype=jnp.int32)

    fwd = jax.jit(domain_classifier_forward)
    logits = fwd(params, input_ids, attention_mask)
    jax.block_until_ready(logits)

    assert logits.shape == (B, N_CLASSES)
    assert bool(jnp.all(jnp.isfinite(logits)))
    print("KERNEL_OK")
</pallas_src>

<mosaic_0001>
module attributes {stable_mosaic.version = 11 : i64} {
  func.func @_fused_forward_kernel(%arg0: memref<16x64xf32, #tpu.memory_space<vmem>>, %arg1: memref<2x8xf32, #tpu.memory_space<vmem>>, %arg2: memref<2x16xf32, #tpu.memory_space<vmem>>, %arg3: memref<1x64xf32, #tpu.memory_space<vmem>>, %arg4: memref<1x64xf32, #tpu.memory_space<vmem>>, %arg5: memref<2x64x192xf32, #tpu.memory_space<vmem>>, %arg6: memref<2x1x192xf32, #tpu.memory_space<vmem>>, %arg7: memref<2x64x64xf32, #tpu.memory_space<vmem>>, %arg8: memref<2x1x64xf32, #tpu.memory_space<vmem>>, %arg9: memref<2x1x64xf32, #tpu.memory_space<vmem>>, %arg10: memref<2x1x64xf32, #tpu.memory_space<vmem>>, %arg11: memref<2x64x128xf32, #tpu.memory_space<vmem>>, %arg12: memref<2x1x128xf32, #tpu.memory_space<vmem>>, %arg13: memref<2x128x64xf32, #tpu.memory_space<vmem>>, %arg14: memref<2x1x64xf32, #tpu.memory_space<vmem>>, %arg15: memref<2x1x64xf32, #tpu.memory_space<vmem>>, %arg16: memref<2x1x64xf32, #tpu.memory_space<vmem>>, %arg17: memref<64x128xf32, #tpu.memory_space<vmem>>, %arg18: memref<1x128xf32, #tpu.memory_space<vmem>>, %arg19: memref<2x128xf32, #tpu.memory_space<vmem>>) attributes {dimension_semantics = [], scalar_prefetch = 0 : i64, scratch_operands = 0 : i64, tpu.core_type = #tpu.core_type<tc>} {
    %c0 = arith.constant 0 : index
    %c0_0 = arith.constant 0 : index
    %0 = vector.load %arg0[%c0, %c0_0] : memref<16x64xf32, #tpu.memory_space<vmem>>, vector<16x64xf32>
    %c0_1 = arith.constant 0 : index
    %c0_2 = arith.constant 0 : index
    %1 = vector.load %arg3[%c0_1, %c0_2] : memref<1x64xf32, #tpu.memory_space<vmem>>, vector<1x64xf32>
    %c0_3 = arith.constant 0 : index
    %c0_4 = arith.constant 0 : index
    %2 = vector.load %arg4[%c0_3, %c0_4] : memref<1x64xf32, #tpu.memory_space<vmem>>, vector<1x64xf32>
    %cst = arith.constant dense<0.000000e+00> : vector<16xf32>
    %3 = vector.multi_reduction <add>, %0, %cst [1] : vector<16x64xf32> to vector<16xf32>
    %4 = vector.shape_cast %3 : vector<16xf32> to vector<16x1xf32>
    %cst_5 = arith.constant 6.400000e+01 : f32
    %5 = vector.broadcast %cst_5 : f32 to vector<16x1xf32>
    %6 = arith.divf %4, %5 : vector<16x1xf32>
    %7 = vector.broadcast %6 : vector<16x1xf32> to vector<16x64xf32>
    %8 = arith.subf %0, %7 : vector<16x64xf32>
    %9 = arith.mulf %8, %8 : vector<16x64xf32>
    %cst_6 = arith.constant dense<0.000000e+00> : vector<16xf32>
    %10 = vector.multi_reduction <add>, %9, %cst_6 [1] : vector<16x64xf32> to vector<16xf32>
    %11 = vector.shape_cast %10 : vector<16xf32> to vector<16x1xf32>
    %cst_7 = arith.constant 6.400000e+01 : f32
    %12 = vector.broadcast %cst_7 : f32 to vector<16x1xf32>
    %13 = arith.divf %11, %12 : vector<16x1xf32>
    %cst_8 = arith.constant 9.99999996E-13 : f32
    %14 = vector.broadcast %cst_8 : f32 to vector<16x1xf32>
    %15 = arith.addf %13, %14 : vector<16x1xf32>
    %16 = math.rsqrt %15 : vector<16x1xf32>
    %17 = vector.broadcast %16 : vector<16x1xf32> to vector<16x64xf32>
    %18 = arith.mulf %8, %17 : vector<16x64xf32>
    %19 = vector.broadcast %1 : vector<1x64xf32> to vector<16x64xf32>
    %20 = arith.mulf %18, %19 : vector<16x64xf32>
    %21 = vector.broadcast %2 : vector<1x64xf32> to vector<16x64xf32>
    %22 = arith.addf %20, %21 : vector<16x64xf32>
    %c0_9 = arith.constant 0 : index
    %c0_10 = arith.constant 0 : index
    %23 = vector.load %arg1[%c0_9, %c0_10] : memref<2x8xf32, #tpu.memory_space<vmem>>, vector<2x8xf32>
    %c0_11 = arith.constant 0 : index
    %c0_12 = arith.constant 0 : index
    %c0_13 = arith.constant 0 : index
    %24 = vector.load %arg5[%c0_11, %c0_12, %c0_13] : memref<2x64x192xf32, #tpu.memory_space<vmem>>, vector<1x64x192xf32>
    %25 = vector.shape_cast %24 : vector<1x64x192xf32> to vector<64x192xf32>
    %cst_14 = arith.constant dense<0.000000e+00> : vector<16x192xf32>
    %26 = tpu.matmul %22, %25, %cst_14 {dimension_numbers = #tpu.dot_dimension_numbers<[1], [0], [0], [1], [0, 0, 1, 1], [], []>} : vector<16x64xf32>, vector<64x192xf32>, vector<16x192xf32> -> vector<16x192xf32>
    %c0_15 = arith.constant 0 : index
    %c0_16 = arith.constant 0 : index
    %c0_17 = arith.constant 0 : index
    %27 = vector.load %arg6[%c0_15, %c0_16, %c0_17] : memref<2x1x192xf32, #tpu.memory_space<vmem>>, vector<1x1x192xf32>
    %28 = vector.shape_cast %27 : vector<1x1x192xf32> to vector<1x192xf32>
    %29 = vector.broadcast %28 : vector<1x192xf32> to vector<16x192xf32>
    %30 = arith.addf %26, %29 : vector<16x192xf32>
    %c0_18 = arith.constant 0 : index
    %c0_19 = arith.constant 0 : index
    %c0_20 = arith.constant 0 : index
    %31 = vector.load %arg7[%c0_18, %c0_19, %c0_20] : memref<2x64x64xf32, #tpu.memory_space<vmem>>, vector<1x64x64xf32>
    %32 = vector.shape_cast %31 : vector<1x64x64xf32> to vector<64x64xf32>
    %cst_21 = arith.constant 0.000000e+00 : f32
    %33 = vector.broadcast %cst_21 : f32 to vector<16x64xf32>
    %34 = vector.extract_strided_slice %30 {offsets = [0, 0], sizes = [16, 32], strides = [1, 1]} : vector<16x192xf32> to vector<16x32xf32>
    %cst_22 = arith.constant 0.176776692 : f32
    %35 = vector.broadcast %cst_22 : f32 to vector<16x32xf32>
    %36 = arith.mulf %34, %35 : vector<16x32xf32>
    %37 = vector.shape_cast %36 : vector<16x32xf32> to vector<2x8x32xf32>
    %38 = vector.extract_strided_slice %30 {offsets = [0, 64], sizes = [16, 32], strides = [1, 1]} : vector<16x192xf32> to vector<16x32xf32>
    %39 = vector.shape_cast %38 : vector<16x32xf32> to vector<2x8x32xf32>
    %40 = vector.extract_strided_slice %30 {offsets = [0, 128], sizes = [16, 32], strides = [1, 1]} : vector<16x192xf32> to vector<16x32xf32>
    %41 = vector.shape_cast %40 : vector<16x32xf32> to vector<2x8x32xf32>
    "tpu.trace_start"() <{level = 10 : i32, message = "bqd,bkd->bqk"}> : () -> ()
    %cst_23 = arith.constant dense<0.000000e+00> : vector<2x8x8xf32>
    %42 = tpu.matmul %37, %39, %cst_23 {dimension_numbers = #tpu.dot_dimension_numbers<[2], [2], [1], [1], [0, 0, 0, 1, 1, 1], [0], [0]>} : vector<2x8x32xf32>, vector<2x8x32xf32>, vector<2x8x8xf32> -> vector<2x8x8xf32>
    "tpu.trace_stop"() : () -> ()
    %43 = vector.shape_cast %23 : vector<2x8xf32> to vector<2x1x8xf32>
    %44 = vector.broadcast %43 : vector<2x1x8xf32> to vector<2x8x8xf32>
    %45 = arith.addf %42, %44 : vector<2x8x8xf32>
    %cst_24 = arith.constant dense<0xFF800000> : vector<2x8xf32>
    %46 = vector.multi_reduction <maximumf>, %45, %cst_24 [2] : vector<2x8x8xf32> to vector<2x8xf32>
    %47 = vector.shape_cast %46 : vector<2x8xf32> to vector<2x8x1xf32>
    %48 = vector.broadcast %47 : vector<2x8x1xf32> to vector<2x8x8xf32>
    %49 = arith.subf %45, %48 : vector<2x8x8xf32>
    %50 = math.exp %49 : vector<2x8x8xf32>
    %cst_25 = arith.constant dense<0.000000e+00> : vector<2x8xf32>
    %51 = vector.multi_reduction <add>, %50, %cst_25 [2] : vector<2x8x8xf32> to vector<2x8xf32>
    %52 = vector.shape_cast %51 : vector<2x8xf32> to vector<2x8x1xf32>
    %53 = tpu.reciprocal %52 {approx = true} : vector<2x8x1xf32> -> vector<2x8x1xf32>
    %54 = vector.broadcast %53 : vector<2x8x1xf32> to vector<2x8x8xf32>
    %55 = arith.mulf %50, %54 : vector<2x8x8xf32>
    "tpu.trace_start"() <{level = 10 : i32, message = "bqk,bkd->bqd"}> : () -> ()
    %cst_26 = arith.constant dense<0.000000e+00> : vector<2x8x32xf32>
    %56 = tpu.matmul %55, %41, %cst_26 {dimension_numbers = #tpu.dot_dimension_numbers<[2], [1], [1], [2], [0, 0, 0, 1, 1, 2], [0], [0]>} : vector<2x8x8xf32>, vector<2x8x32xf32>, vector<2x8x32xf32> -> vector<2x8x32xf32>
    "tpu.trace_stop"() : () -> ()
    %57 = vector.shape_cast %56 : vector<2x8x32xf32> to vector<16x32xf32>
    %58 = vector.extract_strided_slice %32 {offsets = [0, 0], sizes = [32, 64], strides = [1, 1]} : vector<64x64xf32> to vector<32x64xf32>
    %cst_27 = arith.constant dense<0.000000e+00> : vector<16x64xf32>
    %59 = tpu.matmul %57, %58, %cst_27 {dimension_numbers = #tpu.dot_dimension_numbers<[1], [0], [0], [1], [0, 0, 1, 1], [], []>} : vector<16x32xf32>, vector<32x64xf32>, vector<16x64xf32> -> vector<16x64xf32>
    %60 = arith.addf %33, %59 : vector<16x64xf32>
    %61 = vector.extract_strided_slice %30 {offsets = [0, 32], sizes = [16, 32], strides = [1, 1]} : vector<16x192xf32> to vector<16x32xf32>
    %cst_28 = arith.constant 0.176776692 : f32
    %62 = vector.broadcast %cst_28 : f32 to vector<16x32xf32>
    %63 = arith.mulf %61, %62 : vector<16x32xf32>
    %64 = vector.shape_cast %63 : vector<16x32xf32> to vector<2x8x32xf32>
    %65 = vector.extract_strided_slice %30 {offsets = [0, 96], sizes = [16, 32], strides = [1, 1]} : vector<16x192xf32> to vector<16x32xf32>
    %66 = vector.shape_cast %65 : vector<16x32xf32> to vector<2x8x32xf32>
    %67 = vector.extract_strided_slice %30 {offsets = [0, 160], sizes = [16, 32], strides = [1, 1]} : vector<16x192xf32> to vector<16x32xf32>
    %68 = vector.shape_cast %67 : vector<16x32xf32> to vector<2x8x32xf32>
    "tpu.trace_start"() <{level = 10 : i32, message = "bqd,bkd->bqk"}> : () -> ()
    %cst_29 = arith.constant dense<0.000000e+00> : vector<2x8x8xf32>
    %69 = tpu.matmul %64, %66, %cst_29 {dimension_numbers = #tpu.dot_dimension_numbers<[2], [2], [1], [1], [0, 0, 0, 1, 1, 1], [0], [0]>} : vector<2x8x32xf32>, vector<2x8x32xf32>, vector<2x8x8xf32> -> vector<2x8x8xf32>
    "tpu.trace_stop"() : () -> ()
    %70 = vector.shape_cast %23 : vector<2x8xf32> to vector<2x1x8xf32>
    %71 = vector.broadcast %70 : vector<2x1x8xf32> to vector<2x8x8xf32>
    %72 = arith.addf %69, %71 : vector<2x8x8xf32>
    %cst_30 = arith.constant dense<0xFF800000> : vector<2x8xf32>
    %73 = vector.multi_reduction <maximumf>, %72, %cst_30 [2] : vector<2x8x8xf32> to vector<2x8xf32>
    %74 = vector.shape_cast %73 : vector<2x8xf32> to vector<2x8x1xf32>
    %75 = vector.broadcast %74 : vector<2x8x1xf32> to vector<2x8x8xf32>
    %76 = arith.subf %72, %75 : vector<2x8x8xf32>
    %77 = math.exp %76 : vector<2x8x8xf32>
    %cst_31 = arith.constant dense<0.000000e+00> : vector<2x8xf32>
    %78 = vector.multi_reduction <add>, %77, %cst_31 [2] : vector<2x8x8xf32> to vector<2x8xf32>
    %79 = vector.shape_cast %78 : vector<2x8xf32> to vector<2x8x1xf32>
    %80 = tpu.reciprocal %79 {approx = true} : vector<2x8x1xf32> -> vector<2x8x1xf32>
    %81 = vector.broadcast %80 : vector<2x8x1xf32> to vector<2x8x8xf32>
    %82 = arith.mulf %77, %81 : vector<2x8x8xf32>
    "tpu.trace_start"() <{level = 10 : i32, message = "bqk,bkd->bqd"}> : () -> ()
    %cst_32 = arith.constant dense<0.000000e+00> : vector<2x8x32xf32>
    %83 = tpu.matmul %82, %68, %cst_32 {dimension_numbers = #tpu.dot_dimension_numbers<[2], [1], [1], [2], [0, 0, 0, 1, 1, 2], [0], [0]>} : vector<2x8x8xf32>, vector<2x8x32xf32>, vector<2x8x32xf32> -> vector<2x8x32xf32>
    "tpu.trace_stop"() : () -> ()
    %84 = vector.shape_cast %83 : vector<2x8x32xf32> to vector<16x32xf32>
    %85 = vector.extract_strided_slice %32 {offsets = [32, 0], sizes = [32, 64], strides = [1, 1]} : vector<64x64xf32> to vector<32x64xf32>
    %cst_33 = arith.constant dense<0.000000e+00> : vector<16x64xf32>
    %86 = tpu.matmul %84, %85, %cst_33 {dimension_numbers = #tpu.dot_dimension_numbers<[1], [0], [0], [1], [0, 0, 1, 1], [], []>} : vector<16x32xf32>, vector<32x64xf32>, vector<16x64xf32> -> vector<16x64xf32>
    %87 = arith.addf %60, %86 : vector<16x64xf32>
    %c0_34 = arith.constant 0 : index
    %c0_35 = arith.constant 0 : index
    %c0_36 = arith.constant 0 : index
    %88 = vector.load %arg8[%c0_34, %c0_35, %c0_36] : memref<2x1x64xf32, #tpu.memory_space<vmem>>, vector<1x1x64xf32>
    %89 = vector.shape_cast %88 : vector<1x1x64xf32> to vector<1x64xf32>
    %90 = vector.broadcast %89 : vector<1x64xf32> to vector<16x64xf32>
    %91 = arith.addf %87, %90 : vector<16x64xf32>
    %92 = arith.addf %91, %22 : vector<16x64xf32>
    %c0_37 = arith.constant 0 : index
    %c0_38 = arith.constant 0 : index
    %c0_39 = arith.constant 0 : index
    %93 = vector.load %arg9[%c0_37, %c0_38, %c0_39] : memref<2x1x64xf32, #tpu.memory_space<vmem>>, vector<1x1x64xf32>
    %94 = vector.shape_cast %93 : vector<1x1x64xf32> to vector<1x64xf32>
    %c0_40 = arith.constant 0 : index
    %c0_41 = arith.constant 0 : index
    %c0_42 = arith.constant 0 : index
    %95 = vector.load %arg10[%c0_40, %c0_41, %c0_42] : memref<2x1x64xf32, #tpu.memory_space<vmem>>, vector<1x1x64xf32>
    %96 = vector.shape_cast %95 : vector<1x1x64xf32> to vector<1x64xf32>
    %cst_43 = arith.constant dense<0.000000e+00> : vector<16xf32>
    %97 = vector.multi_reduction <add>, %92, %cst_43 [1] : vector<16x64xf32> to vector<16xf32>
    %98 = vector.shape_cast %97 : vector<16xf32> to vector<16x1xf32>
    %cst_44 = arith.constant 6.400000e+01 : f32
    %99 = vector.broadcast %cst_44 : f32 to vector<16x1xf32>
    %100 = arith.divf %98, %99 : vector<16x1xf32>
    %101 = vector.broadcast %100 : vector<16x1xf32> to vector<16x64xf32>
    %102 = arith.subf %92, %101 : vector<16x64xf32>
    %103 = arith.mulf %102, %102 : vector<16x64xf32>
    %cst_45 = arith.constant dense<0.000000e+00> : vector<16xf32>
    %104 = vector.multi_reduction <add>, %103, %cst_45 [1] : vector<16x64xf32> to vector<16xf32>
    %105 = vector.shape_cast %104 : vector<16xf32> to vector<16x1xf32>
    %cst_46 = arith.constant 6.400000e+01 : f32
    %106 = vector.broadcast %cst_46 : f32 to vector<16x1xf32>
    %107 = arith.divf %105, %106 : vector<16x1xf32>
    %cst_47 = arith.constant 9.99999996E-13 : f32
    %108 = vector.broadcast %cst_47 : f32 to vector<16x1xf32>
    %109 = arith.addf %107, %108 : vector<16x1xf32>
    %110 = math.rsqrt %109 : vector<16x1xf32>
    %111 = vector.broadcast %110 : vector<16x1xf32> to vector<16x64xf32>
    %112 = arith.mulf %102, %111 : vector<16x64xf32>
    %113 = vector.broadcast %94 : vector<1x64xf32> to vector<16x64xf32>
    %114 = arith.mulf %112, %113 : vector<16x64xf32>
    %115 = vector.broadcast %96 : vector<1x64xf32> to vector<16x64xf32>
    %116 = arith.addf %114, %115 : vector<16x64xf32>
    %c0_48 = arith.constant 0 : index
    %c0_49 = arith.constant 0 : index
    %c0_50 = arith.constant 0 : index
    %117 = vector.load %arg11[%c0_48, %c0_49, %c0_50] : memref<2x64x128xf32, #tpu.memory_space<vmem>>, vector<1x64x128xf32>
    %118 = vector.shape_cast %117 : vector<1x64x128xf32> to vector<64x128xf32>
    %cst_51 = arith.constant dense<0.000000e+00> : vector<16x128xf32>
    %119 = tpu.matmul %116, %118, %cst_51 {dimension_numbers = #tpu.dot_dimension_numbers<[1], [0], [0], [1], [0, 0, 1, 1], [], []>} : vector<16x64xf32>, vector<64x128xf32>, vector<16x128xf32> -> vector<16x128xf32>
    %c0_52 = arith.constant 0 : index
    %c0_53 = arith.constant 0 : index
    %c0_54 = arith.constant 0 : index
    %120 = vector.load %arg12[%c0_52, %c0_53, %c0_54] : memref<2x1x128xf32, #tpu.memory_space<vmem>>, vector<1x1x128xf32>
    %121 = vector.shape_cast %120 : vector<1x1x128xf32> to vector<1x128xf32>
    %122 = vector.broadcast %121 : vector<1x128xf32> to vector<16x128xf32>
    %123 = arith.addf %119, %122 : vector<16x128xf32>
    %124 = arith.mulf %123, %123 : vector<16x128xf32>
    %125 = arith.mulf %123, %124 : vector<16x128xf32>
    %cst_55 = arith.constant 4.471500e-02 : f32
    %126 = vector.broadcast %cst_55 : f32 to vector<16x128xf32>
    %127 = arith.mulf %126, %125 : vector<16x128xf32>
    %128 = arith.addf %123, %127 : vector<16x128xf32>
    %cst_56 = arith.constant 0.797884583 : f32
    %129 = vector.broadcast %cst_56 : f32 to vector<16x128xf32>
    %130 = arith.mulf %129, %128 : vector<16x128xf32>
    %131 = math.tanh %130 : vector<16x128xf32>
    %cst_57 = arith.constant 1.000000e+00 : f32
    %132 = vector.broadcast %cst_57 : f32 to vector<16x128xf32>
    %133 = arith.addf %132, %131 : vector<16x128xf32>
    %cst_58 = arith.constant 5.000000e-01 : f32
    %134 = vector.broadcast %cst_58 : f32 to vector<16x128xf32>
    %135 = arith.mulf %134, %133 : vector<16x128xf32>
    %136 = arith.mulf %123, %135 : vector<16x128xf32>
    %c0_59 = arith.constant 0 : index
    %c0_60 = arith.constant 0 : index
    %c0_61 = arith.constant 0 : index
    %137 = vector.load %arg13[%c0_59, %c0_60, %c0_61] : memref<2x128x64xf32, #tpu.memory_space<vmem>>, vector<1x128x64xf32>
    %138 = vector.shape_cast %137 : vector<1x128x64xf32> to vector<128x64xf32>
    %cst_62 = arith.constant dense<0.000000e+00> : vector<16x64xf32>
    %139 = tpu.matmul %136, %138, %cst_62 {dimension_numbers = #tpu.dot_dimension_numbers<[1], [0], [0], [1], [0, 0, 1, 1], [], []>} : vector<16x128xf32>, vector<128x64xf32>, vector<16x64xf32> -> vector<16x64xf32>
    %c0_63 = arith.constant 0 : index
    %c0_64 = arith.constant 0 : index
    %c0_65 = arith.constant 0 : index
    %140 = vector.load %arg14[%c0_63, %c0_64, %c0_65] : memref<2x1x64xf32, #tpu.memory_space<vmem>>, vector<1x1x64xf32>
    %141 = vector.shape_cast %140 : vector<1x1x64xf32> to vector<1x64xf32>
    %142 = vector.broadcast %141 : vector<1x64xf32> to vector<16x64xf32>
    %143 = arith.addf %139, %142 : vector<16x64xf32>
    %144 = arith.addf %143, %116 : vector<16x64xf32>
    %c0_66 = arith.constant 0 : index
    %c0_67 = arith.constant 0 : index
    %c0_68 = arith.constant 0 : index
    %145 = vector.load %arg15[%c0_66, %c0_67, %c0_68] : memref<2x1x64xf32, #tpu.memory_space<vmem>>, vector<1x1x64xf32>
    %146 = vector.shape_cast %145 : vector<1x1x64xf32> to vector<1x64xf32>
    %c0_69 = arith.constant 0 : index
    %c0_70 = arith.constant 0 : index
    %c0_71 = arith.constant 0 : index
    %147 = vector.load %arg16[%c0_69, %c0_70, %c0_71] : memref<2x1x64xf32, #tpu.memory_space<vmem>>, vector<1x1x64xf32>
    %148 = vector.shape_cast %147 : vector<1x1x64xf32> to vector<1x64xf32>
    %cst_72 = arith.constant dense<0.000000e+00> : vector<16xf32>
    %149 = vector.multi_reduction <add>, %144, %cst_72 [1] : vector<16x64xf32> to vector<16xf32>
    %150 = vector.shape_cast %149 : vector<16xf32> to vector<16x1xf32>
    %cst_73 = arith.constant 6.400000e+01 : f32
    %151 = vector.broadcast %cst_73 : f32 to vector<16x1xf32>
    %152 = arith.divf %150, %151 : vector<16x1xf32>
    %153 = vector.broadcast %152 : vector<16x1xf32> to vector<16x64xf32>
    %154 = arith.subf %144, %153 : vector<16x64xf32>
    %155 = arith.mulf %154, %154 : vector<16x64xf32>
    %cst_74 = arith.constant dense<0.000000e+00> : vector<16xf32>
    %156 = vector.multi_reduction <add>, %155, %cst_74 [1] : vector<16x64xf32> to vector<16xf32>
    %157 = vector.shape_cast %156 : vector<16xf32> to vector<16x1xf32>
    %cst_75 = arith.constant 6.400000e+01 : f32
    %158 = vector.broadcast %cst_75 : f32 to vector<16x1xf32>
    %159 = arith.divf %157, %158 : vector<16x1xf32>
    %cst_76 = arith.constant 9.99999996E-13 : f32
    %160 = vector.broadcast %cst_76 : f32 to vector<16x1xf32>
    %161 = arith.addf %159, %160 : vector<16x1xf32>
    %162 = math.rsqrt %161 : vector<16x1xf32>
    %163 = vector.broadcast %162 : vector<16x1xf32> to vector<16x64xf32>
    %164 = arith.mulf %154, %163 : vector<16x64xf32>
    %165 = vector.broadcast %146 : vector<1x64xf32> to vector<16x64xf32>
    %166 = arith.mulf %164, %165 : vector<16x64xf32>
    %167 = vector.broadcast %148 : vector<1x64xf32> to vector<16x64xf32>
    %168 = arith.addf %166, %167 : vector<16x64xf32>
    %c1 = arith.constant 1 : index
    %c0_77 = arith.constant 0 : index
    %c0_78 = arith.constant 0 : index
    %169 = vector.load %arg5[%c1, %c0_77, %c0_78] : memref<2x64x192xf32, #tpu.memory_space<vmem>>, vector<1x64x192xf32>
    %170 = vector.shape_cast %169 : vector<1x64x192xf32> to vector<64x192xf32>
    %cst_79 = arith.constant dense<0.000000e+00> : vector<16x192xf32>
    %171 = tpu.matmul %168, %170, %cst_79 {dimension_numbers = #tpu.dot_dimension_numbers<[1], [0], [0], [1], [0, 0, 1, 1], [], []>} : vector<16x64xf32>, vector<64x192xf32>, vector<16x192xf32> -> vector<16x192xf32>
    %c1_80 = arith.constant 1 : index
    %c0_81 = arith.constant 0 : index
    %c0_82 = arith.constant 0 : index
    %172 = vector.load %arg6[%c1_80, %c0_81, %c0_82] : memref<2x1x192xf32, #tpu.memory_space<vmem>>, vector<1x1x192xf32>
    %173 = vector.shape_cast %172 : vector<1x1x192xf32> to vector<1x192xf32>
    %174 = vector.broadcast %173 : vector<1x192xf32> to vector<16x192xf32>
    %175 = arith.addf %171, %174 : vector<16x192xf32>
    %c1_83 = arith.constant 1 : index
    %c0_84 = arith.constant 0 : index
    %c0_85 = arith.constant 0 : index
    %176 = vector.load %arg7[%c1_83, %c0_84, %c0_85] : memref<2x64x64xf32, #tpu.memory_space<vmem>>, vector<1x64x64xf32>
    %177 = vector.shape_cast %176 : vector<1x64x64xf32> to vector<64x64xf32>
    %cst_86 = arith.constant 0.000000e+00 : f32
    %178 = vector.broadcast %cst_86 : f32 to vector<16x64xf32>
    %179 = vector.extract_strided_slice %175 {offsets = [0, 0], sizes = [16, 32], strides = [1, 1]} : vector<16x192xf32> to vector<16x32xf32>
    %cst_87 = arith.constant 0.176776692 : f32
    %180 = vector.broadcast %cst_87 : f32 to vector<16x32xf32>
    %181 = arith.mulf %179, %180 : vector<16x32xf32>
    %182 = vector.shape_cast %181 : vector<16x32xf32> to vector<2x8x32xf32>
    %183 = vector.extract_strided_slice %175 {offsets = [0, 64], sizes = [16, 32], strides = [1, 1]} : vector<16x192xf32> to vector<16x32xf32>
    %184 = vector.shape_cast %183 : vector<16x32xf32> to vector<2x8x32xf32>
    %185 = vector.extract_strided_slice %175 {offsets = [0, 128], sizes = [16, 32], strides = [1, 1]} : vector<16x192xf32> to vector<16x32xf32>
    %186 = vector.shape_cast %185 : vector<16x32xf32> to vector<2x8x32xf32>
    "tpu.trace_start"() <{level = 10 : i32, message = "bqd,bkd->bqk"}> : () -> ()
    %cst_88 = arith.constant dense<0.000000e+00> : vector<2x8x8xf32>
    %187 = tpu.matmul %182, %184, %cst_88 {dimension_numbers = #tpu.dot_dimension_numbers<[2], [2], [1], [1], [0, 0, 0, 1, 1, 1], [0], [0]>} : vector<2x8x32xf32>, vector<2x8x32xf32>, vector<2x8x8xf32> -> vector<2x8x8xf32>
    "tpu.trace_stop"() : () -> ()
    %188 = vector.shape_cast %23 : vector<2x8xf32> to vector<2x1x8xf32>
    %189 = vector.broadcast %188 : vector<2x1x8xf32> to vector<2x8x8xf32>
    %190 = arith.addf %187, %189 : vector<2x8x8xf32>
    %cst_89 = arith.constant dense<0xFF800000> : vector<2x8xf32>
    %191 = vector.multi_reduction <maximumf>, %190, %cst_89 [2] : vector<2x8x8xf32> to vector<2x8xf32>
    %192 = vector.shape_cast %191 : vector<2x8xf32> to vector<2x8x1xf32>
    %193 = vector.broadcast %192 : vector<2x8x1xf32> to vector<2x8x8xf32>
    %194 = arith.subf %190, %193 : vector<2x8x8xf32>
    %195 = math.exp %194 : vector<2x8x8xf32>
    %cst_90 = arith.constant dense<0.000000e+00> : vector<2x8xf32>
    %196 = vector.multi_reduction <add>, %195, %cst_90 [2] : vector<2x8x8xf32> to vector<2x8xf32>
    %197 = vector.shape_cast %196 : vector<2x8xf32> to vector<2x8x1xf32>
    %198 = tpu.reciprocal %197 {approx = true} : vector<2x8x1xf32> -> vector<2x8x1xf32>
    %199 = vector.broadcast %198 : vector<2x8x1xf32> to vector<2x8x8xf32>
    %200 = arith.mulf %195, %199 : vector<2x8x8xf32>
    "tpu.trace_start"() <{level = 10 : i32, message = "bqk,bkd->bqd"}> : () -> ()
    %cst_91 = arith.constant dense<0.000000e+00> : vector<2x8x32xf32>
    %201 = tpu.matmul %200, %186, %cst_91 {dimension_numbers = #tpu.dot_dimension_numbers<[2], [1], [1], [2], [0, 0, 0, 1, 1, 2], [0], [0]>} : vector<2x8x8xf32>, vector<2x8x32xf32>, vector<2x8x32xf32> -> vector<2x8x32xf32>
    "tpu.trace_stop"() : () -> ()
    %202 = vector.shape_cast %201 : vector<2x8x32xf32> to vector<16x32xf32>
    %203 = vector.extract_strided_slice %177 {offsets = [0, 0], sizes = [32, 64], strides = [1, 1]} : vector<64x64xf32> to vector<32x64xf32>
    %cst_92 = arith.constant dense<0.000000e+00> : vector<16x64xf32>
    %204 = tpu.matmul %202, %203, %cst_92 {dimension_numbers = #tpu.dot_dimension_numbers<[1], [0], [0], [1], [0, 0, 1, 1], [], []>} : vector<16x32xf32>, vector<32x64xf32>, vector<16x64xf32> -> vector<16x64xf32>
    %205 = arith.addf %178, %204 : vector<16x64xf32>
    %206 = vector.extract_strided_slice %175 {offsets = [0, 32], sizes = [16, 32], strides = [1, 1]} : vector<16x192xf32> to vector<16x32xf32>
    %cst_93 = arith.constant 0.176776692 : f32
    %207 = vector.broadcast %cst_93 : f32 to vector<16x32xf32>
    %208 = arith.mulf %206, %207 : vector<16x32xf32>
    %209 = vector.shape_cast %208 : vector<16x32xf32> to vector<2x8x32xf32>
    %210 = vector.extract_strided_slice %175 {offsets = [0, 96], sizes = [16, 32], strides = [1, 1]} : vector<16x192xf32> to vector<16x32xf32>
    %211 = vector.shape_cast %210 : vector<16x32xf32> to vector<2x8x32xf32>
    %212 = vector.extract_strided_slice %175 {offsets = [0, 160], sizes = [16, 32], strides = [1, 1]} : vector<16x192xf32> to vector<16x32xf32>
    %213 = vector.shape_cast %212 : vector<16x32xf32> to vector<2x8x32xf32>
    "tpu.trace_start"() <{level = 10 : i32, message = "bqd,bkd->bqk"}> : () -> ()
    %cst_94 = arith.constant dense<0.000000e+00> : vector<2x8x8xf32>
    %214 = tpu.matmul %209, %211, %cst_94 {dimension_numbers = #tpu.dot_dimension_numbers<[2], [2], [1], [1], [0, 0, 0, 1, 1, 1], [0], [0]>} : vector<2x8x32xf32>, vector<2x8x32xf32>, vector<2x8x8xf32> -> vector<2x8x8xf32>
    "tpu.trace_stop"() : () -> ()
    %215 = vector.shape_cast %23 : vector<2x8xf32> to vector<2x1x8xf32>
    %216 = vector.broadcast %215 : vector<2x1x8xf32> to vector<2x8x8xf32>
    %217 = arith.addf %214, %216 : vector<2x8x8xf32>
    %cst_95 = arith.constant dense<0xFF800000> : vector<2x8xf32>
    %218 = vector.multi_reduction <maximumf>, %217, %cst_95 [2] : vector<2x8x8xf32> to vector<2x8xf32>
    %219 = vector.shape_cast %218 : vector<2x8xf32> to vector<2x8x1xf32>
    %220 = vector.broadcast %219 : vector<2x8x1xf32> to vector<2x8x8xf32>
    %221 = arith.subf %217, %220 : vector<2x8x8xf32>
    %222 = math.exp %221 : vector<2x8x8xf32>
    %cst_96 = arith.constant dense<0.000000e+00> : vector<2x8xf32>
    %223 = vector.multi_reduction <add>, %222, %cst_96 [2] : vector<2x8x8xf32> to vector<2x8xf32>
    %224 = vector.shape_cast %223 : vector<2x8xf32> to vector<2x8x1xf32>
    %225 = tpu.reciprocal %224 {approx = true} : vector<2x8x1xf32> -> vector<2x8x1xf32>
    %226 = vector.broadcast %225 : vector<2x8x1xf32> to vector<2x8x8xf32>
    %227 = arith.mulf %222, %226 : vector<2x8x8xf32>
    "tpu.trace_start"() <{level = 10 : i32, message = "bqk,bkd->bqd"}> : () -> ()
    %cst_97 = arith.constant dense<0.000000e+00> : vector<2x8x32xf32>
    %228 = tpu.matmul %227, %213, %cst_97 {dimension_numbers = #tpu.dot_dimension_numbers<[2], [1], [1], [2], [0, 0, 0, 1, 1, 2], [0], [0]>} : vector<2x8x8xf32>, vector<2x8x32xf32>, vector<2x8x32xf32> -> vector<2x8x32xf32>
    "tpu.trace_stop"() : () -> ()
    %229 = vector.shape_cast %228 : vector<2x8x32xf32> to vector<16x32xf32>
    %230 = vector.extract_strided_slice %177 {offsets = [32, 0], sizes = [32, 64], strides = [1, 1]} : vector<64x64xf32> to vector<32x64xf32>
    %cst_98 = arith.constant dense<0.000000e+00> : vector<16x64xf32>
    %231 = tpu.matmul %229, %230, %cst_98 {dimension_numbers = #tpu.dot_dimension_numbers<[1], [0], [0], [1], [0, 0, 1, 1], [], []>} : vector<16x32xf32>, vector<32x64xf32>, vector<16x64xf32> -> vector<16x64xf32>
    %232 = arith.addf %205, %231 : vector<16x64xf32>
    %c1_99 = arith.constant 1 : index
    %c0_100 = arith.constant 0 : index
    %c0_101 = arith.constant 0 : index
    %233 = vector.load %arg8[%c1_99, %c0_100, %c0_101] : memref<2x1x64xf32, #tpu.memory_space<vmem>>, vector<1x1x64xf32>
    %234 = vector.shape_cast %233 : vector<1x1x64xf32> to vector<1x64xf32>
    %235 = vector.broadcast %234 : vector<1x64xf32> to vector<16x64xf32>
    %236 = arith.addf %232, %235 : vector<16x64xf32>
    %237 = arith.addf %236, %168 : vector<16x64xf32>
    %c1_102 = arith.constant 1 : index
    %c0_103 = arith.constant 0 : index
    %c0_104 = arith.constant 0 : index
    %238 = vector.load %arg9[%c1_102, %c0_103, %c0_104] : memref<2x1x64xf32, #tpu.memory_space<vmem>>, vector<1x1x64xf32>
    %239 = vector.shape_cast %238 : vector<1x1x64xf32> to vector<1x64xf32>
    %c1_105 = arith.constant 1 : index
    %c0_106 = arith.constant 0 : index
    %c0_107 = arith.constant 0 : index
    %240 = vector.load %arg10[%c1_105, %c0_106, %c0_107] : memref<2x1x64xf32, #tpu.memory_space<vmem>>, vector<1x1x64xf32>
    %241 = vector.shape_cast %240 : vector<1x1x64xf32> to vector<1x64xf32>
    %cst_108 = arith.constant dense<0.000000e+00> : vector<16xf32>
    %242 = vector.multi_reduction <add>, %237, %cst_108 [1] : vector<16x64xf32> to vector<16xf32>
    %243 = vector.shape_cast %242 : vector<16xf32> to vector<16x1xf32>
    %cst_109 = arith.constant 6.400000e+01 : f32
    %244 = vector.broadcast %cst_109 : f32 to vector<16x1xf32>
    %245 = arith.divf %243, %244 : vector<16x1xf32>
    %246 = vector.broadcast %245 : vector<16x1xf32> to vector<16x64xf32>
    %247 = arith.subf %237, %246 : vector<16x64xf32>
    %248 = arith.mulf %247, %247 : vector<16x64xf32>
    %cst_110 = arith.constant dense<0.000000e+00> : vector<16xf32>
    %249 = vector.multi_reduction <add>, %248, %cst_110 [1] : vector<16x64xf32> to vector<16xf32>
    %250 = vector.shape_cast %249 : vector<16xf32> to vector<16x1xf32>
    %cst_111 = arith.constant 6.400000e+01 : f32
    %251 = vector.broadcast %cst_111 : f32 to vector<16x1xf32>
    %252 = arith.divf %250, %251 : vector<16x1xf32>
    %cst_112 = arith.constant 9.99999996E-13 : f32
    %253 = vector.broadcast %cst_112 : f32 to vector<16x1xf32>
    %254 = arith.addf %252, %253 : vector<16x1xf32>
    %255 = math.rsqrt %254 : vector<16x1xf32>
    %256 = vector.broadcast %255 : vector<16x1xf32> to vector<16x64xf32>
    %257 = arith.mulf %247, %256 : vector<16x64xf32>
    %258 = vector.broadcast %239 : vector<1x64xf32> to vector<16x64xf32>
    %259 = arith.mulf %257, %258 : vector<16x64xf32>
    %260 = vector.broadcast %241 : vector<1x64xf32> to vector<16x64xf32>
    %261 = arith.addf %259, %260 : vector<16x64xf32>
    %c1_113 = arith.constant 1 : index
    %c0_114 = arith.constant 0 : index
    %c0_115 = arith.constant 0 : index
    %262 = vector.load %arg11[%c1_113, %c0_114, %c0_115] : memref<2x64x128xf32, #tpu.memory_space<vmem>>, vector<1x64x128xf32>
    %263 = vector.shape_cast %262 : vector<1x64x128xf32> to vector<64x128xf32>
    %cst_116 = arith.constant dense<0.000000e+00> : vector<16x128xf32>
    %264 = tpu.matmul %261, %263, %cst_116 {dimension_numbers = #tpu.dot_dimension_numbers<[1], [0], [0], [1], [0, 0, 1, 1], [], []>} : vector<16x64xf32>, vector<64x128xf32>, vector<16x128xf32> -> vector<16x128xf32>
    %c1_117 = arith.constant 1 : index
    %c0_118 = arith.constant 0 : index
    %c0_119 = arith.constant 0 : index
    %265 = vector.load %arg12[%c1_117, %c0_118, %c0_119] : memref<2x1x128xf32, #tpu.memory_space<vmem>>, vector<1x1x128xf32>
    %266 = vector.shape_cast %265 : vector<1x1x128xf32> to vector<1x128xf32>
    %267 = vector.broadcast %266 : vector<1x128xf32> to vector<16x128xf32>
    %268 = arith.addf %264, %267 : vector<16x128xf32>
    %269 = arith.mulf %268, %268 : vector<16x128xf32>
    %270 = arith.mulf %268, %269 : vector<16x128xf32>
    %cst_120 = arith.constant 4.471500e-02 : f32
    %271 = vector.broadcast %cst_120 : f32 to vector<16x128xf32>
    %272 = arith.mulf %271, %270 : vector<16x128xf32>
    %273 = arith.addf %268, %272 : vector<16x128xf32>
    %cst_121 = arith.constant 0.797884583 : f32
    %274 = vector.broadcast %cst_121 : f32 to vector<16x128xf32>
    %275 = arith.mulf %274, %273 : vector<16x128xf32>
    %276 = math.tanh %275 : vector<16x128xf32>
    %cst_122 = arith.constant 1.000000e+00 : f32
    %277 = vector.broadcast %cst_122 : f32 to vector<16x128xf32>
    %278 = arith.addf %277, %276 : vector<16x128xf32>
    %cst_123 = arith.constant 5.000000e-01 : f32
    %279 = vector.broadcast %cst_123 : f32 to vector<16x128xf32>
    %280 = arith.mulf %279, %278 : vector<16x128xf32>
    %281 = arith.mulf %268, %280 : vector<16x128xf32>
    %c1_124 = arith.constant 1 : index
    %c0_125 = arith.constant 0 : index
    %c0_126 = arith.constant 0 : index
    %282 = vector.load %arg13[%c1_124, %c0_125, %c0_126] : memref<2x128x64xf32, #tpu.memory_space<vmem>>, vector<1x128x64xf32>
    %283 = vector.shape_cast %282 : vector<1x128x64xf32> to vector<128x64xf32>
    %cst_127 = arith.constant dense<0.000000e+00> : vector<16x64xf32>
    %284 = tpu.matmul %281, %283, %cst_127 {dimension_numbers = #tpu.dot_dimension_numbers<[1], [0], [0], [1], [0, 0, 1, 1], [], []>} : vector<16x128xf32>, vector<128x64xf32>, vector<16x64xf32> -> vector<16x64xf32>
    %c1_128 = arith.constant 1 : index
    %c0_129 = arith.constant 0 : index
    %c0_130 = arith.constant 0 : index
    %285 = vector.load %arg14[%c1_128, %c0_129, %c0_130] : memref<2x1x64xf32, #tpu.memory_space<vmem>>, vector<1x1x64xf32>
    %286 = vector.shape_cast %285 : vector<1x1x64xf32> to vector<1x64xf32>
    %287 = vector.broadcast %286 : vector<1x64xf32> to vector<16x64xf32>
    %288 = arith.addf %284, %287 : vector<16x64xf32>
    %289 = arith.addf %288, %261 : vector<16x64xf32>
    %c1_131 = arith.constant 1 : index
    %c0_132 = arith.constant 0 : index
    %c0_133 = arith.constant 0 : index
    %290 = vector.load %arg15[%c1_131, %c0_132, %c0_133] : memref<2x1x64xf32, #tpu.memory_space<vmem>>, vector<1x1x64xf32>
    %291 = vector.shape_cast %290 : vector<1x1x64xf32> to vector<1x64xf32>
    %c1_134 = arith.constant 1 : index
    %c0_135 = arith.constant 0 : index
    %c0_136 = arith.constant 0 : index
    %292 = vector.load %arg16[%c1_134, %c0_135, %c0_136] : memref<2x1x64xf32, #tpu.memory_space<vmem>>, vector<1x1x64xf32>
    %293 = vector.shape_cast %292 : vector<1x1x64xf32> to vector<1x64xf32>
    %cst_137 = arith.constant dense<0.000000e+00> : vector<16xf32>
    %294 = vector.multi_reduction <add>, %289, %cst_137 [1] : vector<16x64xf32> to vector<16xf32>
    %295 = vector.shape_cast %294 : vector<16xf32> to vector<16x1xf32>
    %cst_138 = arith.constant 6.400000e+01 : f32
    %296 = vector.broadcast %cst_138 : f32 to vector<16x1xf32>
    %297 = arith.divf %295, %296 : vector<16x1xf32>
    %298 = vector.broadcast %297 : vector<16x1xf32> to vector<16x64xf32>
    %299 = arith.subf %289, %298 : vector<16x64xf32>
    %300 = arith.mulf %299, %299 : vector<16x64xf32>
    %cst_139 = arith.constant dense<0.000000e+00> : vector<16xf32>
    %301 = vector.multi_reduction <add>, %300, %cst_139 [1] : vector<16x64xf32> to vector<16xf32>
    %302 = vector.shape_cast %301 : vector<16xf32> to vector<16x1xf32>
    %cst_140 = arith.constant 6.400000e+01 : f32
    %303 = vector.broadcast %cst_140 : f32 to vector<16x1xf32>
    %304 = arith.divf %302, %303 : vector<16x1xf32>
    %cst_141 = arith.constant 9.99999996E-13 : f32
    %305 = vector.broadcast %cst_141 : f32 to vector<16x1xf32>
    %306 = arith.addf %304, %305 : vector<16x1xf32>
    %307 = math.rsqrt %306 : vector<16x1xf32>
    %308 = vector.broadcast %307 : vector<16x1xf32> to vector<16x64xf32>
    %309 = arith.mulf %299, %308 : vector<16x64xf32>
    %310 = vector.broadcast %291 : vector<1x64xf32> to vector<16x64xf32>
    %311 = arith.mulf %309, %310 : vector<16x64xf32>
    %312 = vector.broadcast %293 : vector<1x64xf32> to vector<16x64xf32>
    %313 = arith.addf %311, %312 : vector<16x64xf32>
    %c0_142 = arith.constant 0 : index
    %c0_143 = arith.constant 0 : index
    %314 = vector.load %arg2[%c0_142, %c0_143] : memref<2x16xf32, #tpu.memory_space<vmem>>, vector<2x16xf32>
    %cst_144 = arith.constant dense<0.000000e+00> : vector<2x64xf32>
    %315 = tpu.matmul %314, %313, %cst_144 {dimension_numbers = #tpu.dot_dimension_numbers<[1], [0], [0], [1], [0, 0, 1, 1], [], []>} : vector<2x16xf32>, vector<16x64xf32>, vector<2x64xf32> -> vector<2x64xf32>
    %c0_145 = arith.constant 0 : index
    %c0_146 = arith.constant 0 : index
    %316 = vector.load %arg17[%c0_145, %c0_146] : memref<64x128xf32, #tpu.memory_space<vmem>>, vector<64x128xf32>
    %cst_147 = arith.constant dense<0.000000e+00> : vector<2x128xf32>
    %317 = tpu.matmul %315, %316, %cst_147 {dimension_numbers = #tpu.dot_dimension_numbers<[1], [0], [0], [1], [0, 0, 1, 1], [], []>} : vector<2x64xf32>, vector<64x128xf32>, vector<2x128xf32> -> vector<2x128xf32>
    %c0_148 = arith.constant 0 : index
    %c0_149 = arith.constant 0 : index
    %318 = vector.load %arg18[%c0_148, %c0_149] : memref<1x128xf32, #tpu.memory_space<vmem>>, vector<1x128xf32>
    %319 = vector.broadcast %318 : vector<1x128xf32> to vector<2x128xf32>
    %320 = arith.addf %317, %319 : vector<2x128xf32>
    %c0_150 = arith.constant 0 : index
    %c0_151 = arith.constant 0 : index
    %321 = vector.load %arg19[%c0_150, %c0_151] : memref<2x128xf32, #tpu.memory_space<vmem>>, vector<2x128xf32>
    tpu.vector_store %arg19[%c0_150, %c0_151], %320 {strides = array<i32>} : memref<2x128xf32, #tpu.memory_space<vmem>>, vector<2x128xf32>,
    return
  }
}

</mosaic_0001>

<bundles_post_ra>
// kernel: domain_classifier_forward.1
= control target key start
LH: loop header
LB: loop body
LE: loop exit
PB: predicated region body
PF: predicated region fallthrough
CT: control target
= control target key end

     0   :  { %s4352_s0 = inlined_call_operand.vmem [shape: f32[16,64], index: 0, kind: input, shape index: {}]   ;;  %s4353_s1 = inlined_call_operand.vmem [shape: f32[2,8], index: 1, kind: input, shape index: {}]   ;;  %s4354_s2 = inlined_call_operand.vmem [shape: f32[2,16], index: 2, kind: input, shape index: {}]   ;;  %s4355_s3 = inlined_call_operand.vmem [shape: f32[1,64], index: 3, kind: input, shape index: {}]   ;;  %s4356_s4 = inlined_call_operand.vmem [shape: f32[1,64], index: 4, kind: input, shape index: {}]   ;;  %s4357_s5 = inlined_call_operand.vmem [shape: f32[2,64,192], index: 5, kind: input, shape index: {}]   ;;  %s4358_s6 = inlined_call_operand.vmem [shape: f32[2,1,192], index: 6, kind: input, shape index: {}]   ;;  %s4359_s7 = inlined_call_operand.vmem [shape: f32[2,64,64], index: 7, kind: input, shape index: {}]   ;;  %s4360_s8 = inlined_call_operand.vmem [shape: f32[2,1,64], index: 8, kind: input, shape index: {}]   ;;  %s4361_s9 = inlined_call_operand.vmem [shape: f32[2,1,64], index: 9, kind: input, shape index: {}]   ;;  %s4362_s10 = inlined_call_operand.vmem [shape: f32[2,1,64], index: 10, kind: input, shape index: {}]   ;;  %s4363_s11 = inlined_call_operand.vmem [shape: f32[2,64,128], index: 11, kind: input, shape index: {}]   ;;  %s4364_s12 = inlined_call_operand.vmem [shape: f32[2,1,128], index: 12, kind: input, shape index: {}]   ;;  %s4365_s13 = inlined_call_operand.vmem [shape: f32[2,128,64], index: 13, kind: input, shape index: {}]   ;;  %s4366_s14 = inlined_call_operand.vmem [shape: f32[2,1,64], index: 14, kind: input, shape index: {}]   ;;  %s4367_s15 = inlined_call_operand.vmem [shape: f32[2,1,64], index: 15, kind: input, shape index: {}]   ;;  %s4368_s16 = inlined_call_operand.vmem [shape: f32[2,1,64], index: 16, kind: input, shape index: {}]   ;;  %s4369_s17 = inlined_call_operand.vmem [shape: f32[64,128], index: 17, kind: input, shape index: {}]   ;;  %s4370_s18 = inlined_call_operand.vmem [shape: f32[1,128], index: 18, kind: input, shape index: {}]   ;;  %s4371_s19 = inlined_call_operand.hbm [shape: f32[2,128], index: 19, kind: output, shape index: {}]  }
   0x1   :  { %4373 = sst [smem:[#allocation5_spill]] %s4352_s0 }
   0x2   :  { %4374 = sst [smem:[#allocation6_spill]] %s4353_s1 }
   0x3   :  { %4375 = sst [smem:[#allocation7_spill]] %s4354_s2 }
   0x4   :  { %4376 = sst [smem:[#allocation8_spill]] %s4355_s3 }
   0x5   :  { %s4377_s20 = sld [smem:[#allocation5_spill]]  ;;  %vm67_vm0 = vcmask 523264  }
   0xb   :  { %v63_v0 = vld [vmem:[%s4377_s20] sm:$0xff]  ;;  %v64_v1 = vld [vmem:[%s4377_s20 + $0x8] sm:$0xff] }
   0xc   :  { %24 = vsyncpa [#allocation3], 0  ;;  %v68_v2 = vsel %vm67_vm0, %v63_v0, 0.0  ;;  %v71_v3 = vsel %vm67_vm0, %v64_v1, 0.0  ;;  %v113_v14 = vld [vmem:[%s4357_s5 + $0x8] sm:$0xff]  ;;  %v115_v15 = vld [vmem:[%s4357_s5 + $0x18] sm:$0xff]  ;;  %v130_v55 = vlaneseq }
   0xd   :  { %69 = vadd.xlane.f32.xlu0 %v68_v2  ;;  %v3339_v16 = vpack.c.bf16 %v115_v15, %v113_v14  ;;  %v112_v17 = vld [vmem:[%s4357_s5] sm:$0xff]  ;;  %v114_v18 = vld [vmem:[%s4357_s5 + $0x10] sm:$0xff]  ;;  %v117_v20 = vld [vmem:[%s4357_s5 + $0x28] sm:$0xff]  ;;  %v3610_v33 = vmov 0.0   ;;  %s4378_s25 = sld [smem:[#allocation8_spill]]  ;;  %vm3611_vm1 = vmmov 0  }
   0xe   :  { %v3341_v19 = vpack.c.bf16 %v114_v18, %v112_v17  ;;  %v119_v21 = vld [vmem:[%s4357_s5 + $0x38] sm:$0xff]  ;;  %v116_v23 = vld [vmem:[%s4357_s5 + $0x20] sm:$0xff]  ;;  %v118_v24 = vld [vmem:[%s4357_s5 + $0x30] sm:$0xff]  ;;  %210 = vmatprep.mubr.f32.mxu0 %v3610_v33  ;;  %3081 = vmatprep.subr.mxu1 %v3610_v33  ;;  %v3794_v56 = vshrl.u32 %v130_v55, 7  ;;  %s3612_s28 = smov 64   ;;  %vm269_vm2 = vcmask 261120  }
   0xf   :  { %3340 = vmatprep.subr.bf16.mxu0 %v3339_v16  ;;  %v3343_v22 = vpack.c.bf16 %v119_v21, %v117_v20  ;;  %v3345_v25 = vpack.c.bf16 %v118_v24, %v116_v23  ;;  %v121_v26 = vld [vmem:[%s4357_s5 + $0x48] sm:$0xff]  ;;  %v123_v27 = vld [vmem:[%s4357_s5 + $0x58] sm:$0xff]  ;;  %v120_v28 = vld [vmem:[%s4357_s5 + $0x40] sm:$0xff]  ;;  %3083 = vmatprep.mubr.msk.f32.mxu1 %vm3611_vm1, %v3610_v33  ;;  %s4379_s30 = sld [smem:[#allocation6_spill]]  ;;  %vm423_vm3 = vcmask 64512   ;;  %s3614_s20 = smov 96  }
  0x10   :  { %3342 = vmatpush1.bf16.msra.mxu0 %v3341_v19  ;;  %v3347_v29 = vpack.c.bf16 %v123_v27, %v121_v26  ;;  %v122_v30 = vld [vmem:[%s4357_s5 + $0x50] sm:$0xff]  ;;  %v125_v31 = vld [vmem:[%s4357_s5 + $0x68] sm:$0xff]  ;;  %v127_v32 = vld [vmem:[%s4357_s5 + $0x78] sm:$0xff]  ;;  %v3801_v57 = vsub.s32 0, %v3794_v56  ;;  %v136_v61 = vsub.s32 1, %v3794_v56  ;;  %s3615_s21 = smov 32  }
  0x11   :  { %72 = vadd.xlane.f32.xlu0 %v71_v3  ;;  %3344 = vmatprep.subr.bf16.mxu0 %v3343_v22  ;;  %v3349_v34 = vpack.c.bf16 %v122_v30, %v120_v28  ;;  %v3351_v35 = vpack.c.bf16 %v127_v32, %v125_v31  ;;  %v124_v36 = vld [vmem:[%s4357_s5 + $0x60] sm:$0xff]  ;;  %v126_v37 = vld [vmem:[%s4357_s5 + $0x70] sm:$0xff]  ;;  %vm2664_vm4 = vcmask 130048  }
  0x12   :  { %v3353_v38 = vpack.c.bf16 %v126_v37, %v124_v36  ;;  %v2842_v48 = vld [vmem:[%s4356_s4] ss:$0 sm:$0xff]  ;;  %s3617_s4 = smov [#allocation2]  }
  0x13   :  { %v2841_v46 = vld [vmem:[%s4378_s25] ss:$0 sm:$0xff] }
  0x14   :  { %3346 = vmatpush1.bf16.msra.mxu0 %v3345_v25  ;;  %v128_v58 = vld [vmem:[%s4358_s6] sm:$0x3] }
  0x15   :  { %3348 = vmatprep.subr.bf16.mxu0 %v3347_v29  ;;  %v133_v59 = vrot.slane %v128_v58, %v3801_v57  ;;  %v2845_v14 = vld.sshfl [vmem:[%s4379_s30] sm:$0x11 pattern:$0x75316420] }
  0x16   :  { %v241_v16 = vcombine.high %v2845_v14, %v2845_v14 }
  0x18   :  { %3350 = vmatpush1.bf16.msra.mxu0 %v3349_v34 }
  0x19   :  { %3352 = vmatprep.subr.bf16.mxu0 %v3351_v35 }
  0x1c   :  { %3354 = vmatpush1.bf16.msra.mxu0 %v3353_v38 }
  0x1d   :  { %3116 = vmatprep.subr.mxu0 %v3610_v33 }
  0x9a   :  { %v70_v4 = vpop.xlane.xlu0 %69 }
  0x9b   :  { %v75_v5 = vmul.f32 0.015625, %v70_v4 }
  0x9d   :  { %v77_v6 = vsub.f32 %v63_v0, %v75_v5  ;;  %v137_v0 = vrot.slane %v128_v58, %v136_v61 }
  0x9e   :  { %v73_v7 = vpop.xlane.xlu0 %72 }
  0x9f   :  { %v76_v8 = vmul.f32 0.015625, %v73_v7  ;;  %v79_v9 = vmul.f32 %v77_v6, %v77_v6 }
  0xa1   :  { %v78_v10 = vsub.f32 %v64_v1, %v76_v8  ;;  %v81_v11 = vsel %vm67_vm0, %v79_v9, 0.0 }
  0xa2   :  { %82 = vadd.xlane.f32.xlu1 %v81_v11 }
  0xa3   :  { %v80_v12 = vmul.f32 %v78_v10, %v78_v10 }
  0xa5   :  { %v84_v13 = vsel %vm67_vm0, %v80_v12, 0.0 }
  0xa6   :  { %85 = vadd.xlane.f32.xlu1 %v84_v13 }
 0x12f   :  { %v83_v39 = vpop.xlane.xlu1 %82 }
 0x130   :  { %v87_v40 = vmul.f32 0.015625, %v83_v39 }
 0x132   :  { %v89_v41 = vadd.f32 1e-12, %v87_v40 }
 0x133   :  { %v86_v42 = vpop.xlane.xlu1 %85 }
 0x134   :  { %3526 = vrsqrt.f32 %v89_v41  ;;  %v88_v43 = vmul.f32 0.015625, %v86_v42 }
 0x136   :  { %v90_v44 = vadd.f32 1e-12, %v88_v43 }
 0x138   :  { %3528 = vrsqrt.f32 %v90_v44 }
 0x13e   :  { %v3527_v45 = vpop.eup %3526 }
 0x13f   :  { %v93_v47 = vmul.f32 %v3527_v45, %v77_v6 }
 0x141   :  { %v101_v49 = vmul.f32 %v2841_v46, %v93_v47 }
 0x142   :  { %v3529_v50 = vpop.eup %3528 }
 0x143   :  { %v3785_v51 = vadd.f32 %v2842_v48, %v101_v49  ;;  %v94_v52 = vmul.f32 %v3529_v50, %v78_v10  ;;  %v3613_v10 = vmov 1966171168  }
 0x144   :  { %v243_v11 = vunpack.c.l.s4 %v3613_v10 }
 0x145   :  { %2843 = vmatmul.mubr.msk.f32.vlgmr.msra.gmra.mrb[0].mxu0 %vm67_vm0, %v3785_v51  ;;  %v102_v53 = vmul.f32 %v2841_v46, %v94_v52 }
 0x146   :  { %216 = vmatprep.mubr.f32.mxu0 %v3610_v33  ;;  %v244_v12 = vunpack.c.0.s8 %v243_v11 }
 0x147   :  { %v3790_v54 = vadd.f32 %v2842_v48, %v102_v53 }
 0x148   :  { %v247_v13 = vsub.s32 %v244_v12, %v3794_v56 }
 0x149   :  { %2844 = vmatmul.mubr.msk.f32.gmra.mrb[2].mxu0 %vm67_vm0, %v3790_v54 }
 0x14a   :  { %3118 = vmatprep.mubr.msk.f32.mxu0 %vm3611_vm1, %v3610_v33  ;;  %v248_v15 = vrot.slane %v2845_v14, %v247_v13  ;;  %v255_v18 = vrot.slane %v241_v16, %v247_v13  ;;  %v228_v16 = vld [vmem:[%s4359_s7 + $0x28] sm:$0xff] }
 0x14c   :  { %v3837_v17 = vrot.slane %v248_v15, %v3801_v57  ;;  %v3841_v22 = vrot.slane %v255_v18, %v3801_v57  ;;  %v227_v15 = vld [vmem:[%s4359_s7 + $0x20] sm:$0xff] }
 0x218   :  { %v212_v60 = vpop.f32.mrb[0].mxu0 }
 0x219   :  { %v3808_v62 = vadd.f32 %v212_v60, %v133_v59  ;;  %v214_v63 = vpop.f32.mrb[1].mxu0 }
 0x21a   :  { %v3825_v9 = vadd.f32 %v214_v63, %v137_v0 }
 0x21b   :  { %267 = vrot.lane.b32.xlu0 %v3808_v62, %s3612_s28  ;;  %v231_v6 = vmul.f32 0.17677669, %v3808_v62 }
 0x21c   :  { %v218_v1 = vpop.f32.mrb[2].mxu0 }
 0x21d   :  { %v219_v2 = vadd.f32 %v218_v1, %v133_v59  ;;  %v220_v3 = vpop.f32.mrb[3].mxu0 }
 0x21e   :  { %v3814_v4 = vadd.f32 %v220_v3, %v137_v0 }
 0x21f   :  { %346 = vrot.lane.b32.xlu1 %v219_v2, %s3612_s28  ;;  %v232_v8 = vmul.f32 0.17677669, %v219_v2 }
 0x28d   :  { %v268_v5 = vpop.permute.xlu0 %267 }
 0x28e   :  { %3082 = vmatpush3.xpose.msk.msra.mxu1 %vm269_vm2, %v268_v5 }
 0x28f   :  { %3086 = vmatprep.subr.mxu1 %v3610_v33 }
 0x291   :  { %v347_v7 = vpop.permute.xlu1 %346  ;;  %3084 = vmatmul.mubr.msk.f32.vlgmr.msra.gmra.mrb[0].mxu1 %vm269_vm2, %v231_v6 }
 0x292   :  { %3087 = vmatpush3.xpose.msk.msra.mxu1 %vm269_vm2, %v347_v7  ;;  %3088 = vmatprep.mubr.msk.f32.mxu1 %vm3611_vm1, %v3610_v33 }
 0x293   :  { %3091 = vmatprep.subr.mxu1 %v3610_v33 }
 0x295   :  { %3089 = vmatmul.mubr.msk.f32.vlgmr.msra.gmra.mrb[2].mxu1 %vm269_vm2, %v232_v8 }
 0x296   :  { %3092 = vmatpush3.msra.mxu1 %v3825_v9  ;;  %3093 = vmatprep.mubr.msk.f32.mxu1 %vm3611_vm1, %v3610_v33 }
 0x297   :  { %3096 = vmatprep.subr.mxu1 %v3610_v33 }
 0x364   :  { %v341_v19 = vpop.f32.mrb[0].mxu1 }
 0x365   :  { %v342_v20 = vadd.f32 %v341_v19, %v3837_v17  ;;  %v3085_v21 = vpop.f32.mrb[1].mxu1  ;;  %v3355_v19 = vpack.c.bf16 %v228_v16, %v227_v15 }
 0x367   :  { %v424_v23 = vsel %vm423_vm3, %v342_v20, -inf }
 0x368   :  { %425 = vmax.xlane.f32.xlu1 %v424_v23  ;;  %v419_v24 = vpop.f32.mrb[2].mxu1 }
 0x369   :  { %v420_v25 = vadd.f32 %v419_v24, %v3841_v22  ;;  %v3090_v26 = vpop.f32.mrb[3].mxu1 }
 0x36a   :  { %v230_v26 = vld [vmem:[%s4359_s7 + $0x38] sm:$0xff] }
 0x36b   :  { %v427_v27 = vsel %vm423_vm3, %v420_v25, -inf }
 0x36c   :  { %428 = vmax.xlane.f32.xlu0 %v427_v27 }
 0x379   :  { %592 = vrot.lane.b32.xlu1 %v231_v6, %s3614_s20 }
 0x37d   :  { %672 = vrot.lane.b32.xlu1 %v219_v2, %s3615_s21 }
 0x3f5   :  { %v426_v28 = vpop.xlane.xlu1 %425 }
 0x3f6   :  { %v430_v29 = vsub.f32 %v342_v20, %v426_v28  ;;  %v223_v28 = vld [vmem:[%s4359_s7] sm:$0xff] }
 0x3f8   :  { %v432_v30 = vmul.f32 1.442695, %v430_v29  ;;  %v224_v29 = vld [vmem:[%s4359_s7 + $0x8] sm:$0xff] }
 0x3f9   :  { %v429_v31 = vpop.xlane.xlu0 %428  ;;  %v593_v39 = vpop.permute.xlu1 %592 }
 0x3fa   :  { %3530 = vpow2.f32 %v432_v30  ;;  %v431_v32 = vsub.f32 %v420_v25, %v429_v31  ;;  %v229_v25 = vld [vmem:[%s4359_s7 + $0x30] sm:$0xff]  ;;  %v3363_v30 = vpack.c.bf16 %v224_v29, %v223_v28  ;;  %v1256_v28 = vld [vmem:[%s4365_s13 + $0x8] sm:$0xff] }
 0x3fb   :  { %v3359_v27 = vpack.c.bf16 %v230_v26, %v229_v25 }
 0x3fc   :  { %v434_v34 = vmul.f32 1.442695, %v431_v32  ;;  %v225_v32 = vld [vmem:[%s4359_s7 + $0x10] sm:$0xff] }
 0x3fd   :  { %v673_v40 = vpop.permute.xlu1 %672 }
 0x3fe   :  { %3532 = vpow2.f32 %v434_v34  ;;  %v226_v34 = vld [vmem:[%s4359_s7 + $0x18] sm:$0xff] }
 0x404   :  { %v3531_v35 = vpop.eup %3530 }
 0x405   :  { %v436_v36 = vsel %vm423_vm3, %v3531_v35, 0.0 }
 0x406   :  { %437 = vadd.xlane.f32.xlu0 %v436_v36  ;;  %v3367_v36 = vpack.c.bf16 %v226_v34, %v225_v32  ;;  %v1259_v34 = vld [vmem:[%s4365_s13 + $0x20] sm:$0xff] }
 0x408   :  { %v3533_v37 = vpop.eup %3532 }
 0x409   :  { %v439_v38 = vsel %vm423_vm3, %v3533_v37, 0.0 }
 0x40a   :  { %440 = vadd.xlane.f32.xlu1 %v439_v38 }
 0x41b   :  { %670 = vrot.lane.b32.xlu1 %v232_v8, %s3614_s20 }
 0x41c   :  { %594 = vrot.lane.b32.xlu0 %v3808_v62, %s3615_s21 }
 0x493   :  { %v438_v41 = vpop.xlane.xlu0 %437 }
 0x494   :  { %3534 = vrcp.f32 %v438_v41 }
 0x497   :  { %v441_v42 = vpop.xlane.xlu1 %440  ;;  %v595_v47 = vpop.permute.xlu0 %594 }
 0x498   :  { %3536 = vrcp.f32 %v441_v42 }
 0x49b   :  { %v671_v48 = vpop.permute.xlu1 %670 }
 0x49e   :  { %v3535_v43 = vpop.eup %3534 }
 0x49f   :  { %v444_v44 = vmul.f32 %v3535_v43, %v3531_v35 }
 0x4a1   :  { %3094 = vmatmul.mubr.msk.f32.vlgmr.msra.gmra.mrb[4].mxu1 %vm423_vm3, %v444_v44 }
 0x4a2   :  { %v3537_v45 = vpop.eup %3536  ;;  %3097 = vmatpush3.msra.mxu1 %v3814_v4  ;;  %3098 = vmatprep.mubr.msk.f32.mxu1 %vm3611_vm1, %v3610_v33 }
 0x4a3   :  { %v445_v46 = vmul.f32 %v3537_v45, %v3533_v37  ;;  %3101 = vmatprep.subr.mxu1 %v3610_v33 }
 0x4a5   :  { %3099 = vmatmul.mubr.msk.f32.vlgmr.msra.gmra.mrb[6].mxu1 %vm423_vm3, %v445_v46 }
 0x4a6   :  { %3103 = vmatprep.mubr.msk.f32.mxu1 %vm3611_vm1, %v3610_v33 }
 0x4a9   :  { %3102 = vmatpush3.xpose.msk.msra.mxu1 %vm269_vm2, %v595_v47 }
 0x4aa   :  { %3106 = vmatprep.subr.mxu1 %v3610_v33 }
 0x4ac   :  { %3104 = vmatmul.mubr.msk.f32.vlgmr.msra.gmra.mrb[8].mxu1 %vm269_vm2, %v593_v39  ;;  %v2862_v39 = vld [vmem:[%s4360_s8] ss:$0 sm:$0xff] }
 0x4ad   :  { %3107 = vmatpush3.xpose.msk.msra.mxu1 %vm269_vm2, %v673_v40  ;;  %3108 = vmatprep.mubr.msk.f32.mxu1 %vm3611_vm1, %v3610_v33 }
 0x4ae   :  { %3111 = vmatprep.subr.mxu1 %v3610_v33 }
 0x4b0   :  { %3109 = vmatmul.mubr.msk.f32.vlgmr.msra.gmra.mrb[10].mxu1 %vm269_vm2, %v671_v48 }
 0x4b1   :  { %3113 = vmatprep.mubr.msk.f32.mxu1 %vm3611_vm1, %v3610_v33 }
 0x574   :  { %v3871_v49 = vpop.f32.mrb[4].mxu1 }
 0x575   :  { %v3095_v50 = vpop.f32.mrb[5].mxu1 }
 0x578   :  { %v3873_v52 = vpop.f32.mrb[6].mxu1 }
 0x579   :  { %v3100_v53 = vpop.f32.mrb[7].mxu1 }
 0x57f   :  { %v666_v55 = vpop.f32.mrb[8].mxu1 }
 0x580   :  { %v667_v58 = vadd.f32 %v666_v55, %v3837_v17  ;;  %v3105_v59 = vpop.f32.mrb[9].mxu1 }
 0x582   :  { %v748_v60 = vsel %vm423_vm3, %v667_v58, -inf }
 0x583   :  { %749 = vmax.xlane.f32.xlu0 %v748_v60  ;;  %v744_v62 = vpop.f32.mrb[10].mxu1 }
 0x584   :  { %v745_v63 = vadd.f32 %v744_v62, %v3841_v22  ;;  %v3110_v0 = vpop.f32.mrb[11].mxu1  ;;  %v1142_v62 = vld [vmem:[%s4363_s11 + $0x8] sm:$0xff] }
 0x585   :  { %v1143_v0 = vld [vmem:[%s4363_s11 + $0x10] sm:$0xff] }
 0x586   :  { %v751_v1 = vsel %vm423_vm3, %v745_v63, -inf }
 0x587   :  { %752 = vmax.xlane.f32.xlu1 %v751_v1  ;;  %v1144_v1 = vld [vmem:[%s4363_s11 + $0x18] sm:$0xff] }
 0x598   :  { %848 = vrot.lane.b32.xlu1 %v3814_v4, %s3614_s20 }
 0x610   :  { %v750_v2 = vpop.xlane.xlu0 %749 }
 0x611   :  { %v754_v3 = vsub.f32 %v667_v58, %v750_v2  ;;  %v3375_v2 = vpack.c.bf16 %v1144_v1, %v1143_v0 }
 0x613   :  { %v756_v5 = vmul.f32 1.442695, %v754_v3  ;;  %v1145_v3 = vld [vmem:[%s4363_s11 + $0x20] sm:$0xff] }
 0x614   :  { %v753_v6 = vpop.xlane.xlu1 %752 }
 0x615   :  { %3538 = vpow2.f32 %v756_v5  ;;  %v755_v7 = vsub.f32 %v745_v63, %v753_v6  ;;  %v1146_v5 = vld [vmem:[%s4363_s11 + $0x28] sm:$0xff] }
 0x616   :  { %v3379_v6 = vpack.c.bf16 %v1146_v5, %v1145_v3 }
 0x617   :  { %v758_v8 = vmul.f32 1.442695, %v755_v7  ;;  %v1147_v7 = vld [vmem:[%s4363_s11 + $0x30] sm:$0xff] }
 0x618   :  { %v849_v10 = vpop.permute.xlu1 %848 }
 0x619   :  { %3540 = vpow2.f32 %v758_v8  ;;  %3117 = vmatpush3.msra.mxu0 %v849_v10  ;;  %v1148_v8 = vld [vmem:[%s4363_s11 + $0x38] sm:$0xff] }
 0x61a   :  { %v3383_v10 = vpack.c.bf16 %v1148_v8, %v1147_v7 }
 0x61f   :  { %v3539_v11 = vpop.eup %3538 }
 0x620   :  { %v760_v12 = vsel %vm423_vm3, %v3539_v11, 0.0 }
 0x621   :  { %761 = vadd.xlane.f32.xlu0 %v760_v12 }
 0x623   :  { %v3541_v13 = vpop.eup %3540 }
 0x624   :  { %v763_v14 = vsel %vm423_vm3, %v3541_v13, 0.0 }
 0x625   :  { %764 = vadd.xlane.f32.xlu0 %v763_v14 }
 0x63b   :  { %771 = vrot.lane.b32.xlu0 %v3825_v9, %s3614_s20 }
 0x6ae   :  { %v762_v4 = vpop.xlane.xlu0 %761 }
 0x6af   :  { %3542 = vrcp.f32 %v762_v4 }
 0x6b2   :  { %v765_v18 = vpop.xlane.xlu0 %764 }
 0x6b3   :  { %3544 = vrcp.f32 %v765_v18  ;;  %v2863_v18 = vld [vmem:[%s4361_s9] ss:$0 sm:$0xff] }
 0x6b6   :  { %v772_v20 = vpop.permute.xlu0 %771 }
 0x6b7   :  { %3112 = vmatpush3.msra.mxu1 %v772_v20 }
 0x6b8   :  { %3356 = vmatprep.subr.bf16.mxu1 %v3355_v19 }
 0x6b9   :  { %v3543_v21 = vpop.eup %3542 }
 0x6ba   :  { %v768_v23 = vmul.f32 %v3543_v21, %v3539_v11 }
 0x6bc   :  { %3114 = vmatmul.mubr.msk.f32.vlgmr.msra.gmra.mrb[12].mxu1 %vm423_vm3, %v768_v23  ;;  %v2864_v23 = vld [vmem:[%s4362_s10] ss:$0 sm:$0xff] }
 0x6bd   :  { %v3545_v9 = vpop.eup %3544  ;;  %3358 = vmatpush3.bf16.msra.mxu1 %v3355_v19 }
 0x6be   :  { %v769_v24 = vmul.f32 %v3545_v9, %v3541_v13  ;;  %3360 = vmatprep.subr.bf16.mxu1 %v3359_v27 }
 0x6c0   :  { %3119 = vmatmul.mubr.msk.f32.vlgmr.msra.gmra.mrb[4].mxu0 %vm423_vm3, %v769_v24 }
 0x6c1   :  { %3362 = vmatpush3.bf16.msra.mxu1 %v3359_v27  ;;  %v1255_v27 = vld [vmem:[%s4365_s13] sm:$0xff] }
 0x6c2   :  { %3364 = vmatprep.subr.bf16.mxu1 %v3363_v30  ;;  %v3387_v29 = vpack.c.bf16 %v1256_v28, %v1255_v27 }
 0x78f   :  { %v843_v31 = vpop.f32.mrb[12].mxu1 }
 0x790   :  { %v3115_v35 = vpop.f32.mrb[13].mxu1  ;;  %3129 = vmatprep.mubr.msk.f32.mxu1 %vm269_vm2, %v843_v31  ;;  %v1258_v31 = vld [vmem:[%s4365_s13 + $0x18] sm:$0xff] }
 0x791   :  { %v1260_v35 = vld [vmem:[%s4365_s13 + $0x28] sm:$0xff] }
 0x793   :  { %v920_v37 = vpop.f32.mrb[4].mxu0 }
 0x794   :  { %v3120_v38 = vpop.f32.mrb[5].mxu0  ;;  %3130 = vmatmul.mubr.msk.f32.vlgmr.msra.gmra.mrb[14].mxu1 %vm269_vm2, %v920_v37  ;;  %v1261_v37 = vld [vmem:[%s4365_s13 + $0x30] sm:$0xff] }
 0x795   :  { %3366 = vmatpush3.bf16.msra.mxu1 %v3363_v30  ;;  %3140 = vmatprep.mubr.msk.f32.mxu1 %vm269_vm2, %v3871_v49  ;;  %v1257_v30 = vld [vmem:[%s4365_s13 + $0x10] sm:$0xff]  ;;  %v1262_v38 = vld [vmem:[%s4365_s13 + $0x38] sm:$0xff] }
 0x796   :  { %3368 = vmatprep.subr.bf16.mxu1 %v3367_v36  ;;  %v3391_v32 = vpack.c.bf16 %v1258_v31, %v1257_v30 }
 0x799   :  { %3370 = vmatpush3.bf16.msra.mxu1 %v3367_v36  ;;  %v3395_v36 = vpack.c.bf16 %v1260_v35, %v1259_v34 }
 0x79a   :  { %3388 = vmatprep.subr.bf16.mxu1 %v3387_v29 }
 0x79c   :  { %3141 = vmatmul.mubr.msk.f32.vlgmr.msra.gmra.mrb[14].mxu1 %vm269_vm2, %v3873_v52 }
 0x79d   :  { %3390 = vmatpush3.bf16.msra.mxu1 %v3387_v29 }
 0x79e   :  { %3392 = vmatprep.subr.bf16.mxu1 %v3391_v32 }
 0x7a1   :  { %3394 = vmatpush3.bf16.msra.mxu1 %v3391_v32 }
 0x7a2   :  { %3396 = vmatprep.subr.bf16.mxu1 %v3395_v36 }
 0x7a5   :  { %3398 = vmatpush3.bf16.msra.mxu1 %v3395_v36 }
 0x86f   :  { %v3142_v40 = vpop.f32.mrb[14].mxu1 }
 0x870   :  { %v1094_v41 = vadd.f32 %v3142_v40, %v2862_v39  ;;  %v1077_v42 = vpop.f32.mrb[15].mxu1  ;;  %v1263_v40 = vld [vmem:[%s4365_s13 + $0x40] sm:$0xff] }
 0x871   :  { %v1093_v43 = vadd.f32 %v2862_v39, %v1077_v42  ;;  %v3399_v39 = vpack.c.bf16 %v1262_v38, %v1261_v37  ;;  %v1265_v42 = vld [vmem:[%s4365_s13 + $0x50] sm:$0xff]  ;;  %v2874_v37 = vld [vmem:[%s4357_s5 + $0x98] sm:$0xff] }
 0x872   :  { %v1096_v44 = vadd.f32 %v1094_v41, %v3790_v54  ;;  %v1264_v41 = vld [vmem:[%s4365_s13 + $0x48] sm:$0xff] }
 0x873   :  { %v1095_v45 = vadd.f32 %v1093_v43, %v3785_v51  ;;  %v1141_v51 = vld [vmem:[%s4363_s11] sm:$0xff]  ;;  %3400 = vmatprep.subr.bf16.mxu1 %v3399_v39  ;;  %v3403_v43 = vpack.c.bf16 %v1264_v41, %v1263_v40  ;;  %v2873_v40 = vld [vmem:[%s4357_s5 + $0x90] sm:$0xff] }
 0x874   :  { %v1102_v46 = vsel %vm67_vm0, %v1096_v44, 0.0  ;;  %v3371_v63 = vpack.c.bf16 %v1142_v62, %v1141_v51  ;;  %3402 = vmatpush3.bf16.msra.mxu1 %v3399_v39  ;;  %v2871_v39 = vld [vmem:[%s4357_s5 + $0x80] sm:$0xff] }
 0x875   :  { %1103 = vadd.xlane.f32.xlu0 %v1102_v46  ;;  %v1099_v47 = vsel %vm67_vm0, %v1095_v45, 0.0  ;;  %v1267_v46 = vld [vmem:[%s4365_s13 + $0x60] sm:$0xff]  ;;  %3404 = vmatprep.subr.bf16.mxu1 %v3403_v43  ;;  %v3421_v41 = vpack.c.bf16 %v2873_v40, %v2871_v39 }
 0x876   :  { %1100 = vadd.xlane.f32.xlu1 %v1099_v47  ;;  %3372 = vmatprep.subr.bf16.mxu0 %v3371_v63  ;;  %v1268_v47 = vld [vmem:[%s4365_s13 + $0x68] sm:$0xff] }
 0x877   :  { %3374 = vmatpush3.bf16.msra.mxu0 %v3371_v63 }
 0x878   :  { %3376 = vmatprep.subr.bf16.mxu0 %v3375_v2  ;;  %3406 = vmatpush3.bf16.msra.mxu1 %v3403_v43  ;;  %v2878_v43 = vld [vmem:[%s4357_s5 + $0xb8] sm:$0xff] }
 0x87b   :  { %3378 = vmatpush3.bf16.msra.mxu0 %v3375_v2 }
 0x87c   :  { %3380 = vmatprep.subr.bf16.mxu0 %v3379_v6 }
 0x87f   :  { %3382 = vmatpush3.bf16.msra.mxu0 %v3379_v6 }
 0x880   :  { %3384 = vmatprep.subr.bf16.mxu0 %v3383_v10 }
 0x883   :  { %3386 = vmatpush3.bf16.msra.mxu0 %v3383_v10 }
 0x902   :  { %v1104_v48 = vpop.xlane.xlu0 %1103 }
 0x903   :  { %v1106_v49 = vmul.f32 0.015625, %v1104_v48  ;;  %v1101_v50 = vpop.xlane.xlu1 %1100  ;;  %v3411_v48 = vpack.c.bf16 %v1268_v47, %v1267_v46  ;;  %v2877_v46 = vld [vmem:[%s4357_s5 + $0xb0] sm:$0xff] }
 0x904   :  { %v1105_v52 = vmul.f32 0.015625, %v1101_v50  ;;  %v1270_v50 = vld [vmem:[%s4365_s13 + $0x78] sm:$0xff] }
 0x905   :  { %v1108_v53 = vsub.f32 %v1096_v44, %v1106_v49  ;;  %v1266_v44 = vld [vmem:[%s4365_s13 + $0x58] sm:$0xff]  ;;  %v1269_v49 = vld [vmem:[%s4365_s13 + $0x70] sm:$0xff] }
 0x906   :  { %v1107_v55 = vsub.f32 %v1095_v45, %v1105_v52  ;;  %v3407_v45 = vpack.c.bf16 %v1266_v44, %v1265_v42  ;;  %v3415_v52 = vpack.c.bf16 %v1270_v50, %v1269_v49  ;;  %v2876_v42 = vld [vmem:[%s4357_s5 + $0xa8] sm:$0xff]  ;;  %v2882_v49 = vld [vmem:[%s4357_s5 + $0xd8] sm:$0xff] }
 0x907   :  { %v1110_v58 = vmul.f32 %v1108_v53, %v1108_v53  ;;  %v3423_v44 = vpack.c.bf16 %v2878_v43, %v2876_v42 }
 0x908   :  { %v1109_v59 = vmul.f32 %v1107_v55, %v1107_v55  ;;  %3408 = vmatprep.subr.bf16.mxu1 %v3407_v45 }
 0x909   :  { %v1114_v60 = vsel %vm67_vm0, %v1110_v58, 0.0  ;;  %3410 = vmatpush3.bf16.msra.mxu1 %v3407_v45  ;;  %v2875_v45 = vld [vmem:[%s4357_s5 + $0xa0] sm:$0xff] }
 0x90a   :  { %1115 = vadd.xlane.f32.xlu1 %v1114_v60  ;;  %v1111_v54 = vsel %vm67_vm0, %v1109_v59, 0.0  ;;  %3412 = vmatprep.subr.bf16.mxu1 %v3411_v48  ;;  %v3425_v47 = vpack.c.bf16 %v2877_v46, %v2875_v45 }
 0x90b   :  { %1112 = vadd.xlane.f32.xlu0 %v1111_v54 }
 0x90d   :  { %3414 = vmatpush3.bf16.msra.mxu1 %v3411_v48  ;;  %v2880_v48 = vld [vmem:[%s4357_s5 + $0xc8] sm:$0xff] }
 0x90e   :  { %3416 = vmatprep.subr.bf16.mxu1 %v3415_v52  ;;  %v3427_v50 = vpack.c.bf16 %v2882_v49, %v2880_v48 }
 0x911   :  { %3418 = vmatpush3.bf16.msra.mxu1 %v3415_v52  ;;  %v2879_v52 = vld [vmem:[%s4357_s5 + $0xc0] sm:$0xff] }
 0x912   :  { %3212 = vmatprep.subr.mxu1 %v3610_v33 }
 0x997   :  { %v1116_v11 = vpop.xlane.xlu1 %1115 }
 0x998   :  { %v1118_v12 = vmul.f32 0.015625, %v1116_v11  ;;  %v1113_v13 = vpop.xlane.xlu0 %1112 }
 0x999   :  { %v1117_v14 = vmul.f32 0.015625, %v1113_v13 }
 0x99a   :  { %v1120_v4 = vadd.f32 1e-12, %v1118_v12 }
 0x99b   :  { %v1119_v15 = vadd.f32 1e-12, %v1117_v14 }
 0x99c   :  { %3546 = vrsqrt.f32 %v1120_v4 }
 0x99d   :  { %3548 = vrsqrt.f32 %v1119_v15  ;;  %v2868_v15 = vld [vmem:[%s4366_s14] ss:$0 sm:$0xff] }
 0x9a6   :  { %v3547_v16 = vpop.eup %3546 }
 0x9a7   :  { %v3549_v19 = vpop.eup %3548  ;;  %v1124_v20 = vmul.f32 %v3547_v16, %v1108_v53  ;;  %v2865_v53 = vld [vmem:[%s4364_s12] ss:$0 sm:$0xff] }
 0x9a8   :  { %v1123_v21 = vmul.f32 %v3549_v19, %v1107_v55 }
 0x9a9   :  { %v1132_v9 = vmul.f32 %v2863_v18, %v1124_v20 }
 0x9aa   :  { %v1131_v24 = vmul.f32 %v2863_v18, %v1123_v21 }
 0x9ab   :  { %v3958_v26 = vadd.f32 %v2864_v23, %v1132_v9 }
 0x9ac   :  { %v3956_v25 = vadd.f32 %v2864_v23, %v1131_v24 }
 0x9ae   :  { %3159 = vmatprep.mubr.msk.f32.mxu0 %vm67_vm0, %v3956_v25 }
 0x9af   :  { %3160 = vmatmul.mubr.msk.f32.vlgmr.msra.gmra.mrb[6].mxu0 %vm67_vm0, %v3958_v26 }
 0x9b0   :  { %1499 = vmatprep.mubr.f32.mxu0 %v3610_v33 }
 0xa82   :  { %v3161_v55 = vpop.f32.mrb[6].mxu0 }
 0xa83   :  { %v1234_v58 = vadd.f32 %v3161_v55, %v2865_v53  ;;  %v1228_v59 = vpop.f32.mrb[7].mxu0 }
 0xa84   :  { %v1229_v60 = vadd.f32 %v2865_v53, %v1228_v59  ;;  %v2881_v53 = vld [vmem:[%s4357_s5 + $0xd0] sm:$0xff]  ;;  %v2886_v59 = vld [vmem:[%s4357_s5 + $0xf8] sm:$0xff] }
 0xa85   :  { %v1238_v54 = vmul.f32 %v1234_v58, %v1234_v58  ;;  %v3429_v55 = vpack.c.bf16 %v2881_v53, %v2879_v52 }
 0xa86   :  { %v1237_v51 = vmul.f32 %v1229_v60, %v1229_v60 }
 0xa87   :  { %v1240_v62 = vmul.f32 %v1238_v54, %v1234_v58  ;;  %v2883_v54 = vld [vmem:[%s4357_s5 + $0xe0] sm:$0xff] }
 0xa88   :  { %v1239_v63 = vmul.f32 %v1237_v51, %v1229_v60  ;;  %v2885_v51 = vld [vmem:[%s4357_s5 + $0xf0] sm:$0xff] }
 0xa89   :  { %v1242_v0 = vmul.f32 0.044715, %v1240_v62  ;;  %v3433_v62 = vpack.c.bf16 %v2885_v51, %v2883_v54 }
 0xa8a   :  { %v1241_v1 = vmul.f32 0.044715, %v1239_v63 }
 0xa8b   :  { %v1244_v2 = vadd.f32 %v1242_v0, %v1234_v58 }
 0xa8c   :  { %v1243_v3 = vadd.f32 %v1241_v1, %v1229_v60 }
 0xa8d   :  { %v1246_v5 = vmul.f32 0.7978846, %v1244_v2 }
 0xa8e   :  { %v1245_v6 = vmul.f32 0.7978846, %v1243_v3 }
 0xa8f   :  { %3550 = vtanh.f32 %v1246_v5 }
 0xa90   :  { %3552 = vtanh.f32 %v1245_v6 }
 0xa99   :  { %v3551_v7 = vpop.eup %3550 }
 0xa9a   :  { %v3553_v8 = vpop.eup %3552  ;;  %v1250_v10 = vadd.f32 1.0, %v3551_v7 }
 0xa9b   :  { %v1249_v11 = vadd.f32 1.0, %v3553_v8  ;;  %v2869_v8 = vld [vmem:[%s4367_s15] ss:$0 sm:$0xff] }
 0xa9c   :  { %v1252_v12 = vmul.f32 0.5, %v1250_v10 }
 0xa9d   :  { %v1251_v13 = vmul.f32 0.5, %v1249_v11 }
 0xa9e   :  { %v1254_v4 = vmul.f32 %v1252_v12, %v1234_v58  ;;  %v2884_v58 = vld [vmem:[%s4357_s5 + $0xe8] sm:$0xff]  ;;  %v2870_v12 = vld [vmem:[%s4368_s16] ss:$0 sm:$0xff] }
 0xa9f   :  { %v1253_v14 = vmul.f32 %v1251_v13, %v1229_v60  ;;  %v3431_v60 = vpack.c.bf16 %v2886_v59, %v2884_v58 }
 0xaa1   :  { %3194 = vmatprep.mubr.f32.mxu1 %v1253_v14 }
 0xaa2   :  { %3195 = vmatmul.mubr.f32.vlgmr.msra.gmra.mrb[16].mxu1 %v1254_v4 }
 0xaa3   :  { %3214 = vmatprep.mubr.msk.f32.mxu1 %vm3611_vm1, %v3610_v33 }
 0xb75   :  { %v3196_v16 = vpop.f32.mrb[16].mxu1 }
 0xb76   :  { %v1350_v18 = vadd.f32 %v3196_v16, %v2868_v15  ;;  %v1344_v19 = vpop.f32.mrb[17].mxu1  ;;  %v2887_v16 = vld [vmem:[%s4358_s6 + $0x2] sm:$0x3] }
 0xb77   :  { %v1345_v20 = vadd.f32 %v2868_v15, %v1344_v19  ;;  %v1426_v19 = vrot.slane %v2887_v16, %v136_v61 }
 0xb78   :  { %v1354_v21 = vadd.f32 %v1350_v18, %v3958_v26  ;;  %v1422_v18 = vrot.slane %v2887_v16, %v3801_v57 }
 0xb79   :  { %v1353_v23 = vadd.f32 %v1345_v20, %v3956_v25  ;;  %v2872_v25 = vld [vmem:[%s4357_s5 + $0x88] sm:$0xff]  ;;  %s4380_s5 = sld [smem:[#allocation7_spill]] }
 0xb7a   :  { %v1360_v9 = vsel %vm67_vm0, %v1354_v21, 0.0  ;;  %v3419_v38 = vpack.c.bf16 %v2874_v37, %v2872_v25 }
 0xb7b   :  { %1361 = vadd.xlane.f32.xlu1 %v1360_v9  ;;  %v1357_v24 = vsel %vm67_vm0, %v1353_v23, 0.0 }
 0xb7c   :  { %1358 = vadd.xlane.f32.xlu0 %v1357_v24  ;;  %3420 = vmatprep.subr.bf16.mxu0 %v3419_v38 }
 0xb7d   :  { %3422 = vmatpush1.bf16.msra.mxu0 %v3421_v41 }
 0xb7e   :  { %3424 = vmatprep.subr.bf16.mxu0 %v3423_v44 }
 0xb81   :  { %3426 = vmatpush1.bf16.msra.mxu0 %v3425_v47 }
 0xb82   :  { %3428 = vmatprep.subr.bf16.mxu0 %v3427_v50 }
 0xb85   :  { %3430 = vmatpush1.bf16.msra.mxu0 %v3429_v55 }
 0xb86   :  { %3432 = vmatprep.subr.bf16.mxu0 %v3431_v60 }
 0xb89   :  { %3434 = vmatpush1.bf16.msra.mxu0 %v3433_v62 }
 0xb8a   :  { %3197 = vmatprep.subr.mxu0 %v3610_v33 }
 0xc08   :  { %v1362_v27 = vpop.xlane.xlu1 %1361 }
 0xc09   :  { %v1364_v28 = vmul.f32 0.015625, %v1362_v27  ;;  %v1359_v29 = vpop.xlane.xlu0 %1358 }
 0xc0a   :  { %v1363_v30 = vmul.f32 0.015625, %v1359_v29 }
 0xc0b   :  { %v1366_v31 = vsub.f32 %v1354_v21, %v1364_v28 }
 0xc0c   :  { %v1365_v32 = vsub.f32 %v1353_v23, %v1363_v30 }
 0xc0d   :  { %v1368_v34 = vmul.f32 %v1366_v31, %v1366_v31 }
 0xc0e   :  { %v1367_v35 = vmul.f32 %v1365_v32, %v1365_v32 }
 0xc0f   :  { %v1372_v36 = vsel %vm67_vm0, %v1368_v34, 0.0 }
 0xc10   :  { %1373 = vadd.xlane.f32.xlu1 %v1372_v36  ;;  %v1369_v26 = vsel %vm67_vm0, %v1367_v35, 0.0 }
 0xc11   :  { %1370 = vadd.xlane.f32.xlu0 %v1369_v26 }
 0xc9d   :  { %v1374_v63 = vpop.xlane.xlu1 %1373 }
 0xc9e   :  { %v1376_v0 = vmul.f32 0.015625, %v1374_v63  ;;  %v1371_v1 = vpop.xlane.xlu0 %1370 }
 0xc9f   :  { %v1375_v2 = vmul.f32 0.015625, %v1371_v1 }
 0xca0   :  { %v1378_v3 = vadd.f32 1e-12, %v1376_v0 }
 0xca1   :  { %v1377_v5 = vadd.f32 1e-12, %v1375_v2 }
 0xca2   :  { %3554 = vrsqrt.f32 %v1378_v3 }
 0xca3   :  { %3556 = vrsqrt.f32 %v1377_v5 }
 0xcac   :  { %v3555_v6 = vpop.eup %3554 }
 0xcad   :  { %v3557_v7 = vpop.eup %3556  ;;  %v1382_v11 = vmul.f32 %v3555_v6, %v1366_v31 }
 0xcae   :  { %v1381_v10 = vmul.f32 %v3557_v7, %v1365_v32 }
 0xcaf   :  { %v1390_v4 = vmul.f32 %v2869_v8, %v1382_v11 }
 0xcb0   :  { %v1389_v13 = vmul.f32 %v2869_v8, %v1381_v10 }
 0xcb1   :  { %v4088_v15 = vadd.f32 %v2870_v12, %v1390_v4 }
 0xcb2   :  { %v4083_v14 = vadd.f32 %v2870_v12, %v1389_v13 }
 0xcb4   :  { %2888 = vmatmul.mubr.msk.f32.vlgmr.msra.gmra.mrb[8].mxu0 %vm67_vm0, %v4083_v14 }
 0xcb5   :  { %1505 = vmatprep.mubr.f32.mxu0 %v3610_v33 }
 0xcb8   :  { %2889 = vmatmul.mubr.msk.f32.gmra.mrb[10].mxu0 %vm67_vm0, %v4088_v15 }
 0xcb9   :  { %3199 = vmatprep.mubr.msk.f32.mxu0 %vm3611_vm1, %v3610_v33 }
 0xd87   :  { %v1501_v20 = vpop.f32.mrb[8].mxu0 }
 0xd88   :  { %v1502_v21 = vadd.f32 %v1501_v20, %v1422_v18  ;;  %v1503_v23 = vpop.f32.mrb[9].mxu0 }
 0xd89   :  { %v4100_v9 = vadd.f32 %v1503_v23, %v1426_v19 }
 0xd8a   :  { %1524 = vrot.lane.b32.xlu0 %v1502_v21, %s3612_s28  ;;  %v1521_v57 = vmul.f32 0.17677669, %v1502_v21 }
 0xd8b   :  { %v1507_v24 = vpop.f32.mrb[10].mxu0 }
 0xd8c   :  { %v1508_v27 = vadd.f32 %v1507_v24, %v1422_v18  ;;  %v1509_v28 = vpop.f32.mrb[11].mxu0  ;;  %v2894_v24 = vld [vmem:[%s4359_s7 + $0x60] sm:$0xff] }
 0xd8d   :  { %v4103_v29 = vadd.f32 %v1509_v28, %v1426_v19 }
 0xd8e   :  { %1602 = vrot.lane.b32.xlu1 %v1508_v27, %s3612_s28  ;;  %v1522_v30 = vmul.f32 0.17677669, %v1508_v27 }
 0xd8f   :  { %3213 = vmatpush3.msra.mxu1 %v4103_v29 }
 0xd90   :  { %3222 = vmatprep.subr.mxu1 %v3610_v33 }
 0xdfc   :  { %v1525_v56 = vpop.permute.xlu0 %1524 }
 0xdfd   :  { %3198 = vmatpush3.xpose.msk.msra.mxu0 %vm269_vm2, %v1525_v56 }
 0xdfe   :  { %3202 = vmatprep.subr.mxu0 %v3610_v33 }
 0xe00   :  { %v1603_v61 = vpop.permute.xlu1 %1602  ;;  %3200 = vmatmul.mubr.msk.f32.vlgmr.msra.gmra.mrb[12].mxu0 %vm269_vm2, %v1521_v57 }
 0xe01   :  { %3203 = vmatpush3.xpose.msk.msra.mxu0 %vm269_vm2, %v1603_v61  ;;  %3204 = vmatprep.mubr.msk.f32.mxu0 %vm3611_vm1, %v3610_v33 }
 0xe02   :  { %3207 = vmatprep.subr.mxu0 %v3610_v33 }
 0xe04   :  { %3205 = vmatmul.mubr.msk.f32.vlgmr.msra.gmra.mrb[14].mxu0 %vm269_vm2, %v1522_v30 }
 0xe05   :  { %3208 = vmatpush3.msra.mxu0 %v4100_v9  ;;  %3209 = vmatprep.mubr.msk.f32.mxu0 %vm3611_vm1, %v3610_v33 }
 0xe06   :  { %3217 = vmatprep.subr.mxu0 %v3610_v33 }
 0xed3   :  { %v1597_v31 = vpop.f32.mrb[12].mxu0 }
 0xed4   :  { %v1598_v32 = vadd.f32 %v1597_v31, %v3837_v17  ;;  %v3201_v34 = vpop.f32.mrb[13].mxu0  ;;  %v2896_v31 = vld [vmem:[%s4359_s7 + $0x70] sm:$0xff] }
 0xed6   :  { %v1679_v35 = vsel %vm423_vm3, %v1598_v32, -inf }
 0xed7   :  { %1680 = vmax.xlane.f32.xlu1 %v1679_v35  ;;  %v1675_v36 = vpop.f32.mrb[14].mxu0  ;;  %v2890_v35 = vld [vmem:[%s4359_s7 + $0x40] sm:$0xff] }
 0xed8   :  { %v1676_v26 = vadd.f32 %v1675_v36, %v3841_v22  ;;  %v3206_v25 = vpop.f32.mrb[15].mxu0  ;;  %v2891_v36 = vld [vmem:[%s4359_s7 + $0x48] sm:$0xff] }
 0xeda   :  { %v1682_v37 = vsel %vm423_vm3, %v1676_v26, -inf }
 0xedb   :  { %1683 = vmax.xlane.f32.xlu0 %v1682_v37  ;;  %v2892_v37 = vld [vmem:[%s4359_s7 + $0x50] sm:$0xff] }
 0xee8   :  { %1927 = vrot.lane.b32.xlu1 %v1508_v27, %s3615_s21  ;;  %v2895_v27 = vld [vmem:[%s4359_s7 + $0x68] sm:$0xff] }
 0xeec   :  { %1847 = vrot.lane.b32.xlu1 %v1521_v57, %s3614_s20 }
 0xf64   :  { %v1681_v38 = vpop.xlane.xlu1 %1680 }
 0xf65   :  { %v1685_v39 = vsub.f32 %v1598_v32, %v1681_v38  ;;  %v2897_v32 = vld [vmem:[%s4359_s7 + $0x78] sm:$0xff] }
 0xf66   :  { %v3439_v34 = vpack.c.bf16 %v2897_v32, %v2896_v31  ;;  %v2893_v38 = vld [vmem:[%s4359_s7 + $0x58] sm:$0xff]  ;;  %v2934_v31 = vld [vmem:[%s4365_s13 + $0x90] sm:$0xff] }
 0xf67   :  { %v1687_v40 = vmul.f32 1.442695, %v1685_v39  ;;  %v2935_v32 = vld [vmem:[%s4365_s13 + $0x98] sm:$0xff] }
 0xf68   :  { %v1684_v41 = vpop.xlane.xlu0 %1683  ;;  %v1928_v48 = vpop.permute.xlu1 %1927 }
 0xf69   :  { %3558 = vpow2.f32 %v1687_v40  ;;  %v1686_v42 = vsub.f32 %v1676_v26, %v1684_v41  ;;  %v3443_v26 = vpack.c.bf16 %v2891_v36, %v2890_v35  ;;  %v3447_v40 = vpack.c.bf16 %v2893_v38, %v2892_v37  ;;  %v2936_v35 = vld [vmem:[%s4365_s13 + $0xa0] sm:$0xff]  ;;  %v2937_v36 = vld [vmem:[%s4365_s13 + $0xa8] sm:$0xff]  ;;  %v2939_v37 = vld [vmem:[%s4365_s13 + $0xb8] sm:$0xff] }
 0xf6b   :  { %v1689_v43 = vmul.f32 1.442695, %v1686_v42 }
 0xf6c   :  { %v1848_v49 = vpop.permute.xlu1 %1847 }
 0xf6d   :  { %3560 = vpow2.f32 %v1689_v43  ;;  %v2915_v43 = vld [vmem:[%s4360_s8 + $0x1] ss:$0 sm:$0xff] }
 0xf73   :  { %v3559_v44 = vpop.eup %3558 }
 0xf74   :  { %v1691_v45 = vsel %vm423_vm3, %v3559_v44, 0.0 }
 0xf75   :  { %1692 = vadd.xlane.f32.xlu0 %v1691_v45 }
 0xf77   :  { %v3561_v46 = vpop.eup %3560 }
 0xf78   :  { %v1694_v47 = vsel %vm423_vm3, %v3561_v46, 0.0 }
 0xf79   :  { %1695 = vadd.xlane.f32.xlu1 %v1694_v47 }
 0xf8a   :  { %1925 = vrot.lane.b32.xlu1 %v1522_v30, %s3614_s20 }
 0xf8b   :  { %1849 = vrot.lane.b32.xlu0 %v1502_v21, %s3615_s21 }
0x1002   :  { %v1693_v50 = vpop.xlane.xlu0 %1692 }
0x1003   :  { %3562 = vrcp.f32 %v1693_v50 }
0x1006   :  { %v1696_v52 = vpop.xlane.xlu1 %1695  ;;  %v1850_v58 = vpop.permute.xlu0 %1849 }
0x1007   :  { %3564 = vrcp.f32 %v1696_v52 }
0x100a   :  { %v1926_v54 = vpop.permute.xlu1 %1925 }
0x100d   :  { %v3563_v53 = vpop.eup %3562 }
0x100e   :  { %v1699_v55 = vmul.f32 %v3563_v53, %v3559_v44 }
0x1010   :  { %3210 = vmatmul.mubr.msk.f32.vlgmr.msra.gmra.mrb[16].mxu0 %vm423_vm3, %v1699_v55 }
0x1011   :  { %v3565_v59 = vpop.eup %3564  ;;  %3218 = vmatpush3.xpose.msk.msra.mxu0 %vm269_vm2, %v1850_v58  ;;  %3219 = vmatprep.mubr.msk.f32.mxu0 %vm3611_vm1, %v3610_v33 }
0x1012   :  { %v1700_v60 = vmul.f32 %v3565_v59, %v3561_v46  ;;  %3227 = vmatprep.subr.mxu0 %v3610_v33 }
0x1014   :  { %3215 = vmatmul.mubr.msk.f32.vlgmr.msra.gmra.mrb[18].mxu1 %vm423_vm3, %v1700_v60  ;;  %3220 = vmatmul.mubr.msk.f32.vlgmr.msra.gmra.mrb[18].mxu0 %vm269_vm2, %v1848_v49 }
0x1015   :  { %3223 = vmatpush3.xpose.msk.msra.mxu1 %vm269_vm2, %v1928_v48  ;;  %3224 = vmatprep.mubr.msk.f32.mxu1 %vm3611_vm1, %v3610_v33 }
0x1016   :  { %3232 = vmatprep.subr.mxu1 %v3610_v33  ;;  %3229 = vmatprep.mubr.msk.f32.mxu0 %vm3611_vm1, %v3610_v33 }
0x1018   :  { %3225 = vmatmul.mubr.msk.f32.vlgmr.msra.gmra.mrb[20].mxu1 %vm269_vm2, %v1926_v54 }
0x1019   :  { %3234 = vmatprep.mubr.msk.f32.mxu1 %vm3611_vm1, %v3610_v33 }
0x10e3   :  { %v4146_v51 = vpop.f32.mrb[16].mxu0 }
0x10e4   :  { %v3211_v62 = vpop.f32.mrb[17].mxu0 }
0x10e7   :  { %v4148_v63 = vpop.f32.mrb[18].mxu1  ;;  %v1921_v0 = vpop.f32.mrb[18].mxu0 }
0x10e8   :  { %v1922_v1 = vadd.f32 %v1921_v0, %v3837_v17  ;;  %v3216_v2 = vpop.f32.mrb[19].mxu1  ;;  %v3221_v3 = vpop.f32.mrb[19].mxu0  ;;  %v2921_v0 = vld [vmem:[%s4363_s11 + $0x48] sm:$0xff] }
0x10e9   :  { %v2922_v2 = vld [vmem:[%s4363_s11 + $0x50] sm:$0xff]  ;;  %v2923_v3 = vld [vmem:[%s4363_s11 + $0x58] sm:$0xff] }
0x10ea   :  { %v2003_v5 = vsel %vm423_vm3, %v1922_v1, -inf }
0x10eb   :  { %v1999_v6 = vpop.f32.mrb[20].mxu1  ;;  %2004 = vmax.xlane.f32.xlu0 %v2003_v5  ;;  %v3455_v5 = vpack.c.bf16 %v2923_v3, %v2922_v2 }
0x10ec   :  { %v2000_v7 = vadd.f32 %v1999_v6, %v3841_v22  ;;  %v3226_v8 = vpop.f32.mrb[21].mxu1  ;;  %v2924_v6 = vld [vmem:[%s4363_s11 + $0x60] sm:$0xff] }
0x10ee   :  { %v2006_v10 = vsel %vm423_vm3, %v2000_v7, -inf }
0x10ef   :  { %2007 = vmax.xlane.f32.xlu1 %v2006_v10  ;;  %v2926_v10 = vld [vmem:[%s4363_s11 + $0x70] sm:$0xff] }
0x1100   :  { %2103 = vrot.lane.b32.xlu1 %v4103_v29, %s3614_s20  ;;  %v3435_v29 = vpack.c.bf16 %v2895_v27, %v2894_v24  ;;  %v2919_v27 = vld [vmem:[%s4362_s10 + $0x1] ss:$0 sm:$0xff] }
0x1178   :  { %v2005_v11 = vpop.xlane.xlu0 %2004 }
0x1179   :  { %v2009_v12 = vsub.f32 %v1922_v1, %v2005_v11  ;;  %v2927_v11 = vld [vmem:[%s4363_s11 + $0x78] sm:$0xff] }
0x117b   :  { %v2011_v13 = vmul.f32 1.442695, %v2009_v12  ;;  %v3463_v12 = vpack.c.bf16 %v2927_v11, %v2926_v10 }
0x117c   :  { %v2008_v4 = vpop.xlane.xlu1 %2007 }
0x117d   :  { %3566 = vpow2.f32 %v2011_v13  ;;  %v2010_v17 = vsub.f32 %v2000_v7, %v2008_v4  ;;  %v2925_v7 = vld [vmem:[%s4363_s11 + $0x68] sm:$0xff] }
0x117e   :  { %v3459_v8 = vpack.c.bf16 %v2925_v7, %v2924_v6 }
0x117f   :  { %v2013_v16 = vmul.f32 1.442695, %v2010_v17 }
0x1180   :  { %v2104_v18 = vpop.permute.xlu1 %2103 }
0x1181   :  { %3568 = vpow2.f32 %v2013_v16  ;;  %3233 = vmatpush3.msra.mxu1 %v2104_v18 }
0x1187   :  { %v3567_v19 = vpop.eup %3566 }
0x1188   :  { %v2015_v22 = vsel %vm423_vm3, %v3567_v19, 0.0 }
0x1189   :  { %2016 = vadd.xlane.f32.xlu0 %v2015_v22 }
0x118b   :  { %v3569_v20 = vpop.eup %3568 }
0x118c   :  { %v2018_v21 = vsel %vm423_vm3, %v3569_v20, 0.0 }
0x118d   :  { %2019 = vadd.xlane.f32.xlu0 %v2018_v21 }
0x11a3   :  { %2026 = vrot.lane.b32.xlu0 %v4100_v9, %s3614_s20 }
0x1216   :  { %v2017_v23 = vpop.xlane.xlu0 %2016 }
0x1217   :  { %3570 = vrcp.f32 %v2017_v23 }
0x121a   :  { %v2020_v28 = vpop.xlane.xlu0 %2019 }
0x121b   :  { %3572 = vrcp.f32 %v2020_v28 }
0x121e   :  { %v2027_v56 = vpop.permute.xlu0 %2026 }
0x121f   :  { %3228 = vmatpush3.msra.mxu0 %v2027_v56 }
0x1220   :  { %3436 = vmatprep.subr.bf16.mxu0 %v3435_v29 }
0x1221   :  { %v3571_v57 = vpop.eup %3570 }
0x1222   :  { %v2023_v61 = vmul.f32 %v3571_v57, %v3567_v19 }
0x1224   :  { %3230 = vmatmul.mubr.msk.f32.vlgmr.msra.gmra.mrb[20].mxu0 %vm423_vm3, %v2023_v61  ;;  %v2932_v61 = vld [vmem:[%s4365_s13 + $0x80] sm:$0xff] }
0x1225   :  { %v3573_v9 = vpop.eup %3572  ;;  %3438 = vmatpush3.bf16.msra.mxu0 %v3435_v29 }
0x1226   :  { %v2024_v30 = vmul.f32 %v3573_v9, %v3569_v20  ;;  %3440 = vmatprep.subr.bf16.mxu0 %v3439_v34  ;;  %v2918_v20 = vld [vmem:[%s4361_s9 + $0x1] ss:$0 sm:$0xff]  ;;  %v2933_v9 = vld [vmem:[%s4365_s13 + $0x88] sm:$0xff] }
0x1228   :  { %3235 = vmatmul.mubr.msk.f32.vlgmr.msra.gmra.mrb[22].mxu1 %vm423_vm3, %v2024_v30  ;;  %v3467_v30 = vpack.c.bf16 %v2933_v9, %v2932_v61 }
0x1229   :  { %3442 = vmatpush3.bf16.msra.mxu0 %v3439_v34  ;;  %v3471_v34 = vpack.c.bf16 %v2935_v32, %v2934_v31 }
0x122a   :  { %3444 = vmatprep.subr.bf16.mxu0 %v3443_v26 }
0x12f7   :  { %v2098_v25 = vpop.f32.mrb[20].mxu0 }
0x12f8   :  { %v3231_v39 = vpop.f32.mrb[21].mxu0  ;;  %3245 = vmatprep.mubr.msk.f32.mxu0 %vm269_vm2, %v2098_v25  ;;  %v2938_v25 = vld [vmem:[%s4365_s13 + $0xb0] sm:$0xff] }
0x12f9   :  { %v3479_v38 = vpack.c.bf16 %v2939_v37, %v2938_v25  ;;  %v2940_v39 = vld [vmem:[%s4365_s13 + $0xc0] sm:$0xff] }
0x12fb   :  { %v2175_v41 = vpop.f32.mrb[22].mxu1 }
0x12fc   :  { %v3236_v42 = vpop.f32.mrb[23].mxu1  ;;  %3246 = vmatmul.mubr.msk.f32.vlgmr.msra.gmra.mrb[22].mxu0 %vm269_vm2, %v2175_v41  ;;  %v2942_v41 = vld [vmem:[%s4365_s13 + $0xd0] sm:$0xff] }
0x12fd   :  { %3446 = vmatpush3.bf16.msra.mxu0 %v3443_v26  ;;  %3256 = vmatprep.mubr.msk.f32.mxu0 %vm269_vm2, %v4146_v51  ;;  %v3475_v26 = vpack.c.bf16 %v2937_v36, %v2936_v35 }
0x12fe   :  { %3448 = vmatprep.subr.bf16.mxu0 %v3447_v40 }
0x1301   :  { %3450 = vmatpush3.bf16.msra.mxu0 %v3447_v40  ;;  %v2941_v40 = vld [vmem:[%s4365_s13 + $0xc8] sm:$0xff] }
0x1302   :  { %3468 = vmatprep.subr.bf16.mxu0 %v3467_v30  ;;  %v3483_v42 = vpack.c.bf16 %v2941_v40, %v2940_v39 }
0x1304   :  { %3257 = vmatmul.mubr.msk.f32.vlgmr.msra.gmra.mrb[22].mxu0 %vm269_vm2, %v4148_v63 }
0x1305   :  { %3470 = vmatpush3.bf16.msra.mxu0 %v3467_v30 }
0x1306   :  { %3472 = vmatprep.subr.bf16.mxu0 %v3471_v34 }
0x1309   :  { %3474 = vmatpush3.bf16.msra.mxu0 %v3471_v34 }
0x130a   :  { %3476 = vmatprep.subr.bf16.mxu0 %v3475_v26 }
0x130d   :  { %3478 = vmatpush3.bf16.msra.mxu0 %v3475_v26 }
0x130e   :  { %3480 = vmatprep.subr.bf16.mxu0 %v3479_v38 }
0x1311   :  { %3482 = vmatpush3.bf16.msra.mxu0 %v3479_v38  ;;  %v2952_v38 = vld [vmem:[%s4367_s15 + $0x1] ss:$0 sm:$0xff] }
0x1312   :  { %3484 = vmatprep.subr.bf16.mxu0 %v3483_v42 }
0x1315   :  { %3486 = vmatpush3.bf16.msra.mxu0 %v3483_v42  ;;  %v2953_v42 = vld [vmem:[%s4368_s16 + $0x1] ss:$0 sm:$0xff] }
0x13d7   :  { %v3258_v44 = vpop.f32.mrb[22].mxu0 }
0x13d8   :  { %v2350_v45 = vadd.f32 %v3258_v44, %v2915_v43  ;;  %v2332_v46 = vpop.f32.mrb[23].mxu0 }
0x13d9   :  { %v2349_v47 = vadd.f32 %v2915_v43, %v2332_v46  ;;  %v2943_v43 = vld [vmem:[%s4365_s13 + $0xd8] sm:$0xff]  ;;  %v2945_v46 = vld [vmem:[%s4365_s13 + $0xe8] sm:$0xff] }
0x13da   :  { %v2352_v48 = vadd.f32 %v2350_v45, %v4088_v15  ;;  %v3487_v44 = vpack.c.bf16 %v2943_v43, %v2942_v41  ;;  %v2944_v45 = vld [vmem:[%s4365_s13 + $0xe0] sm:$0xff] }
0x13db   :  { %v2351_v49 = vadd.f32 %v2349_v47, %v4083_v14  ;;  %v2920_v14 = vld [vmem:[%s4363_s11 + $0x40] sm:$0xff]  ;;  %v3491_v47 = vpack.c.bf16 %v2945_v46, %v2944_v45 }
0x13dc   :  { %v2360_v50 = vsel %vm67_vm0, %v2352_v48, 0.0  ;;  %v3451_v1 = vpack.c.bf16 %v2921_v0, %v2920_v14  ;;  %3488 = vmatprep.subr.bf16.mxu0 %v3487_v44 }
0x13dd   :  { %2361 = vadd.xlane.f32.xlu0 %v2360_v50  ;;  %v2357_v52 = vsel %vm67_vm0, %v2351_v49, 0.0  ;;  %3490 = vmatpush3.bf16.msra.mxu0 %v3487_v44 }
0x13de   :  { %2358 = vadd.xlane.f32.xlu1 %v2357_v52  ;;  %3452 = vmatprep.subr.bf16.mxu1 %v3451_v1  ;;  %v2929_v52 = vld [vmem:[%s4364_s12 + $0x1] ss:$0 sm:$0xff]  ;;  %s2833_s12 = sshll.u32 %s3617_s4, 4  ;;  %s2834_s12 = int_to_ptr.vmem [resolvable:$true] %s2833_s12 }
0x13df   :  { %3454 = vmatpush3.bf16.msra.mxu1 %v3451_v1  ;;  %3492 = vmatprep.subr.bf16.mxu0 %v3491_v47  ;;  %p3591_p1 = scmp.lt.s32.totalorder %s2834_s12, %s2834_s12 }
0x13e0   :  { %3456 = vmatprep.subr.bf16.mxu1 %v3455_v5 }
0x13e1   :  { %3494 = vmatpush3.bf16.msra.mxu0 %v3491_v47  ;;  %v2738_v47 = vld [vmem:[%s4369_s17] sm:$0xff] }
0x13e3   :  { %3458 = vmatpush3.bf16.msra.mxu1 %v3455_v5 }
0x13e4   :  { %3460 = vmatprep.subr.bf16.mxu1 %v3459_v8 }
0x13e7   :  { %3462 = vmatpush3.bf16.msra.mxu1 %v3459_v8 }
0x13e8   :  { %3464 = vmatprep.subr.bf16.mxu1 %v3463_v12 }
0x13eb   :  { %3466 = vmatpush3.bf16.msra.mxu1 %v3463_v12 }
0x146a   :  { %v2362_v53 = vpop.xlane.xlu0 %2361 }
0x146b   :  { %v2364_v55 = vmul.f32 0.015625, %v2362_v53  ;;  %v2359_v58 = vpop.xlane.xlu1 %2358 }
0x146c   :  { %v2363_v59 = vmul.f32 0.015625, %v2359_v58 }
0x146d   :  { %v2366_v60 = vsub.f32 %v2352_v48, %v2364_v55  ;;  %v2946_v48 = vld [vmem:[%s4365_s13 + $0xf0] sm:$0xff] }
0x146e   :  { %v2365_v54 = vsub.f32 %v2351_v49, %v2363_v59  ;;  %v2947_v49 = vld [vmem:[%s4365_s13 + $0xf8] sm:$0xff] }
0x146f   :  { %v2368_v51 = vmul.f32 %v2366_v60, %v2366_v60  ;;  %v3495_v50 = vpack.c.bf16 %v2947_v49, %v2946_v48  ;;  %v2739_v48 = vld [vmem:[%s4369_s17 + $0x8] sm:$0xff] }
0x1470   :  { %v2367_v62 = vmul.f32 %v2365_v54, %v2365_v54 }
0x1471   :  { %v2372_v63 = vsel %vm67_vm0, %v2368_v51, 0.0  ;;  %3496 = vmatprep.subr.bf16.mxu0 %v3495_v50 }
0x1472   :  { %2373 = vadd.xlane.f32.xlu1 %v2372_v63  ;;  %v2369_v15 = vsel %vm67_vm0, %v2367_v62, 0.0  ;;  %3498 = vmatpush3.bf16.msra.mxu0 %v3495_v50  ;;  %v2663_v50 = vld [vmem:[%s4380_s5] sm:$0x3] }
0x1473   :  { %2370 = vadd.xlane.f32.xlu0 %v2369_v15 }
0x14ff   :  { %v2374_v13 = vpop.xlane.xlu1 %2373 }
0x1500   :  { %v2376_v4 = vmul.f32 0.015625, %v2374_v13  ;;  %v2371_v17 = vpop.xlane.xlu0 %2370  ;;  %v2949_v13 = vld [vmem:[%s4366_s14 + $0x1] ss:$0 sm:$0xff] }
0x1501   :  { %v2375_v16 = vmul.f32 0.015625, %v2371_v17 }
0x1502   :  { %v2378_v18 = vadd.f32 1e-12, %v2376_v4 }
0x1503   :  { %v2377_v19 = vadd.f32 1e-12, %v2375_v16 }
0x1504   :  { %3574 = vrsqrt.f32 %v2378_v18 }
0x1505   :  { %3576 = vrsqrt.f32 %v2377_v19 }
0x150e   :  { %v3575_v22 = vpop.eup %3574 }
0x150f   :  { %v3577_v21 = vpop.eup %3576  ;;  %v2382_v23 = vmul.f32 %v3575_v22, %v2366_v60 }
0x1510   :  { %v2381_v24 = vmul.f32 %v3577_v21, %v2365_v54 }
0x1511   :  { %v2390_v28 = vmul.f32 %v2918_v20, %v2382_v23 }
0x1512   :  { %v2389_v29 = vmul.f32 %v2918_v20, %v2381_v24 }
0x1513   :  { %v4233_v57 = vadd.f32 %v2919_v27, %v2390_v28 }
0x1514   :  { %v4231_v56 = vadd.f32 %v2919_v27, %v2389_v29 }
0x1516   :  { %3275 = vmatprep.mubr.msk.f32.mxu1 %vm67_vm0, %v4231_v56 }
0x1517   :  { %3276 = vmatmul.mubr.msk.f32.vlgmr.msra.gmra.mrb[24].mxu1 %vm67_vm0, %v4233_v57 }
0x1518   :  { %3317 = vmatprep.mubr.msk.f32.mxu1 %vm3611_vm1, %v3610_v33 }
0x15ea   :  { %v3277_v53 = vpop.f32.mrb[24].mxu1 }
0x15eb   :  { %v2494_v55 = vadd.f32 %v3277_v53, %v2929_v52  ;;  %v2488_v58 = vpop.f32.mrb[25].mxu1  ;;  %v2740_v53 = vld [vmem:[%s4369_s17 + $0x10] sm:$0xff] }
0x15ec   :  { %v2489_v59 = vadd.f32 %v2929_v52, %v2488_v58  ;;  %v3503_v52 = vpack.c.bf16 %v2739_v48, %v2738_v47 }
0x15ed   :  { %v2498_v60 = vmul.f32 %v2494_v55, %v2494_v55 }
0x15ee   :  { %v2497_v54 = vmul.f32 %v2489_v59, %v2489_v59 }
0x15ef   :  { %v2500_v51 = vmul.f32 %v2498_v60, %v2494_v55  ;;  %v2743_v60 = vld [vmem:[%s4369_s17 + $0x28] sm:$0xff] }
0x15f0   :  { %v2499_v62 = vmul.f32 %v2497_v54, %v2489_v59 }
0x15f1   :  { %v2502_v63 = vmul.f32 0.044715, %v2500_v51  ;;  %v2744_v51 = vld [vmem:[%s4369_s17 + $0x30] sm:$0xff] }
0x15f2   :  { %v2501_v15 = vmul.f32 0.044715, %v2499_v62 }
0x15f3   :  { %v2504_v14 = vadd.f32 %v2502_v63, %v2494_v55 }
0x15f4   :  { %v2503_v0 = vadd.f32 %v2501_v15, %v2489_v59 }
0x15f5   :  { %v2506_v1 = vmul.f32 0.7978846, %v2504_v14  ;;  %v2955_v14 = vld [vmem:[%s4370_s18] ss:$0 sm:$0xff] }
0x15f6   :  { %v2505_v2 = vmul.f32 0.7978846, %v2503_v0 }
0x15f7   :  { %3578 = vtanh.f32 %v2506_v1 }
0x15f8   :  { %3580 = vtanh.f32 %v2505_v2 }
0x1601   :  { %v3579_v3 = vpop.eup %3578 }
0x1602   :  { %v3581_v5 = vpop.eup %3580  ;;  %v2510_v6 = vadd.f32 1.0, %v3579_v3 }
0x1603   :  { %v2509_v7 = vadd.f32 1.0, %v3581_v5 }
0x1604   :  { %v2512_v8 = vmul.f32 0.5, %v2510_v6 }
0x1605   :  { %v2511_v10 = vmul.f32 0.5, %v2509_v7 }
0x1606   :  { %v2514_v12 = vmul.f32 %v2512_v8, %v2494_v55  ;;  %v2741_v55 = vld [vmem:[%s4369_s17 + $0x18] sm:$0xff] }
0x1607   :  { %v2513_v11 = vmul.f32 %v2511_v10, %v2489_v59  ;;  %v3506_v58 = vpack.c.bf16 %v2741_v55, %v2740_v53  ;;  %v2742_v59 = vld [vmem:[%s4369_s17 + $0x20] sm:$0xff] }
0x1608   :  { %v3509_v54 = vpack.c.bf16 %v2743_v60, %v2742_v59 }
0x1609   :  { %3310 = vmatprep.mubr.f32.mxu0 %v2513_v11 }
0x160a   :  { %3311 = vmatmul.mubr.f32.vlgmr.msra.gmra.mrb[24].mxu0 %v2514_v12 }
0x16dd   :  { %v3312_v4 = vpop.f32.mrb[24].mxu0 }
0x16de   :  { %v2612_v17 = vadd.f32 %v3312_v4, %v2949_v13  ;;  %v2606_v16 = vpop.f32.mrb[25].mxu0 }
0x16df   :  { %v2607_v18 = vadd.f32 %v2949_v13, %v2606_v16 }
0x16e0   :  { %v2616_v19 = vadd.f32 %v2612_v17, %v4233_v57 }
0x16e1   :  { %v2615_v22 = vadd.f32 %v2607_v18, %v4231_v56  ;;  %v3616_v56 = vmov 0.0|0.0  }
0x16e2   :  { %v2624_v20 = vsel %vm67_vm0, %v2616_v19, 0.0  ;;  %3499 = vmatprep.subr.bf16.mxu1 %v3616_v56 }
0x16e3   :  { %2625 = vadd.xlane.f32.xlu1 %v2624_v20  ;;  %v2621_v21 = vsel %vm67_vm0, %v2615_v22, 0.0 }
0x16e4   :  { %2622 = vadd.xlane.f32.xlu0 %v2621_v21 }
0x1770   :  { %v2626_v23 = vpop.xlane.xlu1 %2625 }
0x1771   :  { %v2628_v24 = vmul.f32 0.015625, %v2626_v23  ;;  %v2623_v27 = vpop.xlane.xlu0 %2622 }
0x1772   :  { %v2627_v28 = vmul.f32 0.015625, %v2623_v27 }
0x1773   :  { %v2630_v29 = vsub.f32 %v2616_v19, %v2628_v24 }
0x1774   :  { %v2629_v61 = vsub.f32 %v2615_v22, %v2627_v28 }
0x1775   :  { %v2632_v9 = vmul.f32 %v2630_v29, %v2630_v29 }
0x1776   :  { %v2631_v30 = vmul.f32 %v2629_v61, %v2629_v61 }
0x1777   :  { %v2636_v31 = vsel %vm67_vm0, %v2632_v9, 0.0 }
0x1778   :  { %2637 = vadd.xlane.f32.xlu1 %v2636_v31  ;;  %v2633_v57 = vsel %vm67_vm0, %v2631_v30, 0.0 }
0x1779   :  { %2634 = vadd.xlane.f32.xlu0 %v2633_v57 }
0x1805   :  { %v2638_v32 = vpop.xlane.xlu1 %2637 }
0x1806   :  { %v2640_v34 = vmul.f32 0.015625, %v2638_v32  ;;  %v2635_v35 = vpop.xlane.xlu0 %2634 }
0x1807   :  { %v2639_v36 = vmul.f32 0.015625, %v2635_v35 }
0x1808   :  { %v2642_v26 = vadd.f32 1e-12, %v2640_v34 }
0x1809   :  { %v2641_v25 = vadd.f32 1e-12, %v2639_v36 }
0x180a   :  { %3582 = vrsqrt.f32 %v2642_v26 }
0x180b   :  { %3584 = vrsqrt.f32 %v2641_v25 }
0x1814   :  { %v3583_v37 = vpop.eup %3582 }
0x1815   :  { %v3585_v39 = vpop.eup %3584  ;;  %v2646_v40 = vmul.f32 %v3583_v37, %v2630_v29 }
0x1816   :  { %v2645_v41 = vmul.f32 %v3585_v39, %v2629_v61 }
0x1817   :  { %v2654_v43 = vmul.f32 %v2952_v38, %v2646_v40 }
0x1818   :  { %v2653_v44 = vmul.f32 %v2952_v38, %v2645_v41 }
0x1819   :  { %v2662_v45 = vadd.f32 %v2953_v42, %v2654_v43 }
0x181a   :  { %v2661_v46 = vadd.f32 %v2953_v42, %v2653_v44 }
0x181c   :  { %v3500_v49 = vpack.c.bf16 %v2662_v45, %v2661_v46 }
0x181e   :  { %3501 = vmatpush3.bf16.msra.mxu1 %v3500_v49 }
0x181f   :  { %3502 = vmatprep.subr.bf16.mxu1 %v3616_v56 }
0x1821   :  { %3318 = vmatmul.mubr.msk.f32.vlgmr.msra.gmra.mrb[26].mxu1 %vm2664_vm4, %v2663_v50 }
0x1822   :  { %3504 = vmatpush3.bf16.msra.mxu1 %v3503_v52  ;;  %3336 = vmatprep.mubr.msk.f32.mxu1 %vm3611_vm1, %v3610_v33  ;;  %v2745_v33 = vld [vmem:[%s4369_s17 + $0x38] sm:$0xff]  ;;  %s3586_s17 = scalar_lea.vmem %s2834_s12, 32 }
0x1823   :  { %3505 = vmatprep.subr.bf16.mxu1 %v3616_v56  ;;  %v3512_v62 = vpack.c.bf16 %v2745_v33, %v2744_v51  ;;  %p3587_p0 = scmp.ne.s32.totalorder %s2834_s12, %s3586_s17  ;;  %p3592_p2 = scmp.lt.s32.totalorder %s3586_s17, %s3586_s17 }
0x1825   :  { %p3593_p3 = por %p3592_p2, %p3591_p1 }
0x1826   :  { %3507 = vmatpush3.bf16.msra.mxu1 %v3506_v58 }
0x1827   :  { %3508 = vmatprep.subr.bf16.mxu1 %v3616_v56  ;;  %p3594_p4 = pnand %p3593_p3, %p3587_p0 }
0x182a   :  { %3510 = vmatpush3.bf16.msra.mxu1 %v3509_v54 }
0x182b   :  { %3511 = vmatprep.subr.bf16.mxu1 %v3616_v56 }
0x182e   :  { %3513 = vmatpush3.bf16.msra.mxu1 %v3512_v62 }
0x18f4   :  { %v2734_v63 = vpop.f32.mrb[26].mxu1 }
0x18f5   :  { %v3319_v15 = vpop.f32.mrb[27].mxu1  ;;  %3337 = vmatmul.mubr.msk.f32.vlgmr.msra.gmra.mrb[28].mxu1 %vm67_vm0, %v2734_v63 }
0x19c8   :  { %v2822_v0 = vpop.f32.mrb[28].mxu1 }
0x19c9   :  { %v2823_v1 = vadd.f32 %v2955_v14, %v2822_v0  ;;  %v3338_v2 = vpop.f32.mrb[29].mxu1 }
0x19cb   :  { %2826 = vst [vmem:[#allocation2] sm:$0x3] %v2823_v1 }
0x19cc   :  { %3597 = shalt.err (!%p3594_p4)
}
0x19cd   :  { %s3598_s27 = scalar_lea.hbm %s4371_s19, 32 }
0x19ce   :  { %p3599_p5 = scmp.ne.s32.totalorder %s4371_s19, %s3598_s27  ;;  %p3602_p6 = scmp.lt.u32.totalorder %s3598_s27, %s4371_s19 }
0x19d0   :  { %p3604_p7 = pnand %p3602_p6, %p3599_p5 }
0x19d2   :  { %3607 = shalt.err (!%p3604_p7)
}
0x19d3   :  { %2836 = dma.vmem_to_hbm [thread:$0]  %s2834_s12, 32, %s4371_s19, [#allocation3]  }
0x19d4   :  { %3608 = dma.done.wait [#allocation3], 32  }
0x19d5   :  { %3609 = vsyncadd [#allocation3], 4294967264 }
0x19d6   :  { %2840 = vsyncpa [#allocation3], 1 }

</bundles_post_ra>
